<compile_context>
chip_gen: v5e
topology: v5e:2x2
jax: 0.10.0
libtpu: 0.0.40
codegen_flags: <defaults>
</compile_context>

<pallas_src>
import functools

import jax
import jax.numpy as jnp
import numpy as np
from jax.experimental import pallas as pl
from jax.experimental.pallas import tpu as pltpu


# ----------------------------------------------------------------------------
# Fused bidirectional GRU recurrence kernel.
# grid = (2 directions, n_time_chunks); hidden state carried in VMEM scratch.
# ----------------------------------------------------------------------------
def _bigru_kernel(gi_ref, whh_ref, bhh_ref, h0_ref, out_ref, h_scratch):
    """One (direction, time-chunk) grid step.

    gi_ref : (1, T, B, 3H) precomputed x @ W_ih + b_ih for this chunk
    whh_ref: (1, H, 3H)    recurrent weights for this direction (gates fused)
    bhh_ref: (1, 1, 3H)
    h0_ref : (1, B, H)     initial hidden state for this direction
    out_ref: (1, T, B, H)
    h_scratch: (B, H)      hidden state carried across time chunks
    """
    d = pl.program_id(0)          # 0 = forward, 1 = backward
    c = pl.program_id(1)          # time-chunk index (sequential)
    T = gi_ref.shape[1]
    H = h0_ref.shape[-1]

    @pl.when(c == 0)
    def _():
        h_scratch[...] = h0_ref[0]

    w_hh = whh_ref[0]             # (H, 3H)
    b_hh = bhh_ref[0]             # (1, 3H)

    def step(j, h):
        # Forward consumes chunk rows 0..T-1 in order; backward in reverse.
        row = j + d * (T - 1 - 2 * j)
        gi = gi_ref[0, row]                                              # (B, 3H)
        gh = jnp.dot(h, w_hh, preferred_element_type=jnp.float32) + b_hh  # (B, 3H)
        # PyTorch gate order: r, z, n
        r = jax.nn.sigmoid(gi[:, :H] + gh[:, :H])
        z = jax.nn.sigmoid(gi[:, H:2 * H] + gh[:, H:2 * H])
        n = jnp.tanh(gi[:, 2 * H:] + r * gh[:, 2 * H:])
        h_new = (1.0 - z) * n + z * h
        out_ref[0, row] = h_new
        return h_new

    h_last = jax.lax.fori_loop(0, T, step, h_scratch[...], unroll=True)
    h_scratch[...] = h_last


def _pick_chunk(S, max_chunk=32):
    """Largest divisor of S that is <= max_chunk (timesteps per grid step)."""
    t = min(S, max_chunk)
    while S % t:
        t -= 1
    return t


def bigru_layer(gi, whh_t, bhh, h0):
    """Run one bidirectional GRU layer.

    gi    : (2, S, B, 3H) precomputed input gates (b_ih folded in)
    whh_t : (2, H, 3H)
    bhh   : (2, 1, 3H)
    h0    : (2, B, H)
    returns out: (2, S, B, H)  -- out[0] forward outputs, out[1] backward outputs
            (already stored at the ORIGINAL sequence positions; no flip needed)
    """
    _, S, B, G3 = gi.shape
    H = G3 // 3
    T = _pick_chunk(S)
    nc = S // T

    def chunk_idx(d, c):
        # forward: chunk c ; backward: chunk nc-1-c (reversed walk over the sequence)
        return c + d * (nc - 1 - 2 * c)

    return pl.pallas_call(
        _bigru_kernel,
        out_shape=jax.ShapeDtypeStruct((2, S, B, H), jnp.float32),
        grid_spec=pltpu.PrefetchScalarGridSpec(
            num_scalar_prefetch=0,
            grid=(2, nc),
            in_specs=[
                pl.BlockSpec((1, T, B, G3), lambda d, c: (d, chunk_idx(d, c), 0, 0)),
                pl.BlockSpec((1, H, G3), lambda d, c: (d, 0, 0)),
                pl.BlockSpec((1, 1, G3), lambda d, c: (d, 0, 0)),
                pl.BlockSpec((1, B, H), lambda d, c: (d, 0, 0)),
            ],
            out_specs=pl.BlockSpec((1, T, B, H),
                                   lambda d, c: (d, chunk_idx(d, c), 0, 0)),
            scratch_shapes=[pltpu.VMEM((B, H), jnp.float32)],
        ),
        compiler_params=pltpu.CompilerParams(
            dimension_semantics=("parallel", "arbitrary")),
    )(gi, whh_t, bhh, h0)


# ----------------------------------------------------------------------------
# Output head kernel: Linear(2H -> C) + LogSoftmax over the SEQUENCE axis
# (legacy nn.LogSoftmax(dim=None) -> dim=0 for 3-D input).
# grid = (B,): one batch element per grid step, single fused matmul per direction,
# full sequence resident so the axis-0 reduction is in-block.
# ----------------------------------------------------------------------------
def _head_kernel(y_ref, w_ref, b_ref, out_ref):
    # y_ref: (1, 2, S, H) for one batch element; w_ref: (2, H, C); b_ref: (1, C)
    yf = y_ref[0, 0]                  # (S, H) forward half
    yb = y_ref[0, 1]                  # (S, H) backward half
    logits = (jnp.dot(yf, w_ref[0], preferred_element_type=jnp.float32)
              + jnp.dot(yb, w_ref[1], preferred_element_type=jnp.float32)
              + b_ref[...])           # (S, C)
    # Log-softmax over the sequence axis (axis 0) — intentional, see header note.
    m = jnp.max(logits, axis=0, keepdims=True)
    lse = jnp.log(jnp.sum(jnp.exp(logits - m), axis=0, keepdims=True)) + m
    out_ref[0] = logits - lse


def output_head(y, w_split, b):
    """y: (B, 2, S, H); w_split: (2, H, C); b: (1, C) -> (B, S, C) log-probs."""
    B, _, S, H = y.shape
    C = w_split.shape[-1]
    return pl.pallas_call(
        _head_kernel,
        out_shape=jax.ShapeDtypeStruct((B, S, C), jnp.float32),
        grid_spec=pltpu.PrefetchScalarGridSpec(
            num_scalar_prefetch=0,
            grid=(B,),
            in_specs=[
                pl.BlockSpec((1, 2, S, H), lambda b_: (b_, 0, 0, 0)),
                pl.BlockSpec((2, H, C), lambda b_: (0, 0, 0)),
                pl.BlockSpec((1, C), lambda b_: (0, 0)),
            ],
            out_specs=pl.BlockSpec((1, S, C), lambda b_: (b_, 0, 0)),
        ),
        compiler_params=pltpu.CompilerParams(dimension_semantics=("parallel",)),
    )(y, w_split, b)


# ----------------------------------------------------------------------------
# Full SimpleGRU forward: XLA does the big (non-recurrent) input-projection
# matmuls and layout glue; Pallas does the sequential recurrence and the head.
# ----------------------------------------------------------------------------
def _simple_gru_forward(x, params, hidden=None):
    gru_params = params["gru"]
    num_layers = len(gru_params)
    S, B, _ = x.shape
    H = gru_params[0][0][1].shape[0] // 3            # w_hh: (3H, H)
    C = params["w_out"].shape[0]
    if hidden is None:
        hidden = jnp.zeros((num_layers * 2, B, H), jnp.float32)

    hp = jax.lax.Precision.HIGHEST
    layer_out = None                                  # (2, S, B, H)
    hn = []
    for layer in range(num_layers):
        dirs = gru_params[layer]
        wih = jnp.stack([d[0] for d in dirs])         # (2, 3H, D_in)
        whh = jnp.stack([d[1] for d in dirs])         # (2, 3H, H)
        bih = jnp.stack([d[2] for d in dirs])         # (2, 3H)
        bhh = jnp.stack([d[3] for d in dirs])         # (2, 3H)
        wih_t = jnp.transpose(wih, (0, 2, 1))         # (2, D_in, 3H)
        whh_t = jnp.transpose(whh, (0, 2, 1))         # (2, H, 3H)

        # Hoisted input projection: one big matmul over all S*B rows, both dirs,
        # with b_ih folded in (removes 3 broadcast-adds per timestep in-kernel).
        if layer == 0:
            gi = jnp.einsum("sbd,zdg->zsbg", x, wih_t, precision=hp)
        else:
            # previous layer output is kept split per direction -> contract both
            # halves without materializing the (S, B, 2H) concatenation.
            wih_split = wih_t.reshape(2, 2, H, 3 * H)         # (z, d_in, H, 3H)
            gi = jnp.einsum("dsbh,zdhg->zsbg", layer_out, wih_split, precision=hp)
        gi = gi + bih[:, None, None, :]

        h0 = hidden[2 * layer:2 * layer + 2]                   # (2, B, H)
        layer_out = bigru_layer(gi, whh_t, bhh.reshape(2, 1, 3 * H), h0)

        # Final hidden states recovered from the outputs (no per-step hn store):
        hn.append(layer_out[0, S - 1])                         # forward h_T
        hn.append(layer_out[1, 0])                             # backward h_T
    next_hidden = jnp.stack(hn, axis=0)

    # Head: Linear(2H -> C) + LogSoftmax over the sequence axis.
    w_out_split = params["w_out"].T.reshape(2, H, C)           # (2, H, C)
    y_head = jnp.transpose(layer_out, (2, 0, 1, 3))            # (B, 2, S, H)
    out_bsc = output_head(y_head, w_out_split, params["b_out"].reshape(1, C))
    log_probs = jnp.transpose(out_bsc, (1, 0, 2))              # (S, B, C)
    return log_probs, next_hidden


simple_gru_forward = jax.jit(_simple_gru_forward)


# ----------------------------------------------------------------------------
# Deterministic parameter init (same shapes as nn.GRU / nn.Linear).
# ----------------------------------------------------------------------------
def init_params(key, input_size, hidden_size, num_layers, num_classes):
    H = hidden_size
    bound = 1.0 / np.sqrt(H)
    gru = []
    for layer in range(num_layers):
        d_in = input_size if layer == 0 else 2 * H
        dirs = []
        for _ in range(2):  # forward, backward
            key, k1, k2, k3, k4 = jax.random.split(key, 5)
            wih = jax.random.uniform(k1, (3 * H, d_in), jnp.float32, -bound, bound)
            whh = jax.random.uniform(k2, (3 * H, H), jnp.float32, -bound, bound)
            bih = jax.random.uniform(k3, (3 * H,), jnp.float32, -bound, bound)
            bhh = jax.random.uniform(k4, (3 * H,), jnp.float32, -bound, bound)
            dirs.append((wih, whh, bih, bhh))
        gru.append(tuple(dirs))
    key, kw, kb = jax.random.split(key, 3)
    bound_o = 1.0 / np.sqrt(2 * H)
    w_out = jax.random.uniform(kw, (num_classes, 2 * H), jnp.float32, -bound_o, bound_o)
    b_out = jax.random.uniform(kb, (num_classes,), jnp.float32, -bound_o, bound_o)
    return {"gru": gru, "w_out": w_out, "b_out": b_out}


# ----------------------------------------------------------------------------
# Pure-JAX reference (mirrors torch.nn.GRU semantics) for a correctness check.
# ----------------------------------------------------------------------------
def _ref_gru_direction(x, wih, whh, bih, bhh, h0):
    H = h0.shape[-1]
    hp = jax.lax.Precision.HIGHEST

    def step(h, x_t):
        gi = jnp.dot(x_t, wih.T, precision=hp) + bih
        gh = jnp.dot(h, whh.T, precision=hp) + bhh
        i_r, i_z, i_n = gi[:, :H], gi[:, H:2 * H], gi[:, 2 * H:]
        h_r, h_z, h_n = gh[:, :H], gh[:, H:2 * H], gh[:, 2 * H:]
        r = jax.nn.sigmoid(i_r + h_r)
        z = jax.nn.sigmoid(i_z + h_z)
        n = jnp.tanh(i_n + r * h_n)
        h_new = (1.0 - z) * n + z * h
        return h_new, h_new

    hT, ys = jax.lax.scan(step, h0, x)
    return ys, hT


def ref_forward(x, params, hidden=None):
    num_layers = len(params["gru"])
    S, B, _ = x.shape
    H = params["gru"][0][0][1].shape[-1]
    if hidden is None:
        hidden = jnp.zeros((num_layers * 2, B, H), jnp.float32)
    layer_in = x
    hn = []
    for layer in range(num_layers):
        (wih_f, whh_f, bih_f, bhh_f), (wih_b, whh_b, bih_b, bhh_b) = params["gru"][layer]
        out_f, hT_f = _ref_gru_direction(layer_in, wih_f, whh_f, bih_f, bhh_f,
                                         hidden[2 * layer])
        out_b_rev, hT_b = _ref_gru_direction(jnp.flip(layer_in, 0),
                                             wih_b, whh_b, bih_b, bhh_b,
                                             hidden[2 * layer + 1])
        layer_in = jnp.concatenate([out_f, jnp.flip(out_b_rev, 0)], axis=-1)
        hn += [hT_f, hT_b]
    next_hidden = jnp.stack(hn, axis=0)
    hp = jax.lax.Precision.HIGHEST
    logits = jnp.dot(layer_in, params["w_out"].T, precision=hp) + params["b_out"]
    log_probs = jax.nn.log_softmax(logits, axis=0)   # legacy dim=0 for 3-D input
    return log_probs, next_hidden


if __name__ == "__main__":
    input_size, hidden_size, num_layers, num_classes = 16, 32, 2, 5
    seq_len, batch = 8, 2

    key = jax.random.PRNGKey(0)
    kp, kx = jax.random.split(key)
    params = init_params(kp, input_size, hidden_size, num_layers, num_classes)
    x = jax.random.normal(kx, (seq_len, batch, input_size), jnp.float32)

    log_probs, next_hidden = simple_gru_forward(x, params)
    jax.block_until_ready((log_probs, next_hidden))

    assert log_probs.shape == (seq_len, batch, num_classes)
    assert next_hidden.shape == (num_layers * 2, batch, hidden_size)

    ref_lp, ref_h = ref_forward(x, params)
    np.testing.assert_allclose(np.asarray(log_probs), np.asarray(ref_lp),
                               atol=2e-2, rtol=2e-2)
    np.testing.assert_allclose(np.asarray(next_hidden), np.asarray(ref_h),
                               atol=2e-2, rtol=2e-2)

    print("KERNEL_OK")
</pallas_src>

<mosaic_0001>
module attributes {stable_mosaic.version = 11 : i64} {
  func.func @_bigru_kernel(%arg0: i32, %arg1: i32, %arg2: memref<1x8x2x96xf32, #tpu.memory_space<vmem>>, %arg3: memref<1x32x96xf32, #tpu.memory_space<vmem>>, %arg4: memref<1x1x96xf32, #tpu.memory_space<vmem>>, %arg5: memref<1x2x32xf32, #tpu.memory_space<vmem>>, %arg6: memref<1x8x2x32xf32, #tpu.memory_space<vmem>>, %arg7: memref<2x32xf32, #tpu.memory_space<vmem>>) attributes {dimension_semantics = [#tpu.dimension_semantics<parallel>, #tpu.dimension_semantics<arbitrary>], iteration_bounds = array<i64: 2, 1>, scalar_prefetch = 0 : i64, scratch_operands = 1 : i64, tpu.core_type = #tpu.core_type<tc>, window_params = [{transform_indices = @transform_0, window_bounds = array<i64: 1, 8, 2, 96>}, {transform_indices = @transform_1, window_bounds = array<i64: 1, 32, 96>}, {transform_indices = @transform_2, window_bounds = array<i64: 1, 1, 96>}, {transform_indices = @transform_3, window_bounds = array<i64: 1, 2, 32>}, {transform_indices = @transform_4, window_bounds = array<i64: 1, 8, 2, 32>}]} {
    %c0_i32 = arith.constant 0 : i32
    %0 = arith.cmpi eq, %arg1, %c0_i32 : i32
    %1 = arith.extui %0 : i1 to i32
    %c0_i32_0 = arith.constant 0 : i32
    %2 = arith.cmpi ne, %1, %c0_i32_0 : i32
    scf.if %2 {
      %c0_106 = arith.constant 0 : index
      %c0_107 = arith.constant 0 : index
      %c0_108 = arith.constant 0 : index
      %329 = vector.load %arg5[%c0_106, %c0_107, %c0_108] : memref<1x2x32xf32, #tpu.memory_space<vmem>>, vector<1x2x32xf32>
      %330 = vector.shape_cast %329 : vector<1x2x32xf32> to vector<2x32xf32>
      %c0_109 = arith.constant 0 : index
      %c0_110 = arith.constant 0 : index
      %331 = vector.load %arg7[%c0_109, %c0_110] : memref<2x32xf32, #tpu.memory_space<vmem>>, vector<2x32xf32>
      tpu.vector_store %arg7[%c0_109, %c0_110], %330 {strides = array<i32>} : memref<2x32xf32, #tpu.memory_space<vmem>>, vector<2x32xf32>,
    } else {
    }
    %c0 = arith.constant 0 : index
    %c0_1 = arith.constant 0 : index
    %c0_2 = arith.constant 0 : index
    %3 = vector.load %arg3[%c0, %c0_1, %c0_2] : memref<1x32x96xf32, #tpu.memory_space<vmem>>, vector<1x32x96xf32>
    %4 = vector.shape_cast %3 : vector<1x32x96xf32> to vector<32x96xf32>
    %c0_3 = arith.constant 0 : index
    %c0_4 = arith.constant 0 : index
    %c0_5 = arith.constant 0 : index
    %5 = vector.load %arg4[%c0_3, %c0_4, %c0_5] : memref<1x1x96xf32, #tpu.memory_space<vmem>>, vector<1x1x96xf32>
    %6 = vector.shape_cast %5 : vector<1x1x96xf32> to vector<1x96xf32>
    %c0_6 = arith.constant 0 : index
    %c0_7 = arith.constant 0 : index
    %7 = vector.load %arg7[%c0_6, %c0_7] : memref<2x32xf32, #tpu.memory_space<vmem>>, vector<2x32xf32>
    %c0_i32_8 = arith.constant 0 : i32
    %c2_i32 = arith.constant 2 : i32
    %8 = arith.muli %c2_i32, %c0_i32_8 : i32
    %c7_i32 = arith.constant 7 : i32
    %9 = arith.subi %c7_i32, %8 : i32
    %10 = arith.muli %arg0, %9 : i32
    %11 = arith.addi %c0_i32_8, %10 : i32
    %c0_9 = arith.constant 0 : index
    %12 = arith.index_cast %11 : i32 to index
    %c0_10 = arith.constant 0 : index
    %c0_11 = arith.constant 0 : index
    %13 = vector.load %arg2[%c0_9, %12, %c0_10, %c0_11] : memref<1x8x2x96xf32, #tpu.memory_space<vmem>>, vector<1x1x2x96xf32>
    %14 = vector.shape_cast %13 : vector<1x1x2x96xf32> to vector<2x96xf32>
    %cst = arith.constant dense<0.000000e+00> : vector<2x96xf32>
    %15 = tpu.matmul %7, %4, %cst {dimension_numbers = #tpu.dot_dimension_numbers<[1], [0], [0], [1], [0, 0, 1, 1], [], []>} : vector<2x32xf32>, vector<32x96xf32>, vector<2x96xf32> -> vector<2x96xf32>
    %16 = vector.broadcast %6 : vector<1x96xf32> to vector<2x96xf32>
    %17 = arith.addf %15, %16 : vector<2x96xf32>
    %18 = vector.extract_strided_slice %14 {offsets = [0, 0], sizes = [2, 32], strides = [1, 1]} : vector<2x96xf32> to vector<2x32xf32>
    %19 = vector.extract_strided_slice %17 {offsets = [0, 0], sizes = [2, 32], strides = [1, 1]} : vector<2x96xf32> to vector<2x32xf32>
    %20 = arith.addf %18, %19 : vector<2x32xf32>
    %21 = arith.negf %20 : vector<2x32xf32>
    %22 = math.exp %21 : vector<2x32xf32>
    %cst_12 = arith.constant 1.000000e+00 : f32
    %23 = vector.broadcast %cst_12 : f32 to vector<2x32xf32>
    %24 = arith.addf %23, %22 : vector<2x32xf32>
    %25 = arith.divf %23, %24 : vector<2x32xf32>
    %26 = vector.extract_strided_slice %14 {offsets = [0, 32], sizes = [2, 32], strides = [1, 1]} : vector<2x96xf32> to vector<2x32xf32>
    %27 = vector.extract_strided_slice %17 {offsets = [0, 32], sizes = [2, 32], strides = [1, 1]} : vector<2x96xf32> to vector<2x32xf32>
    %28 = arith.addf %26, %27 : vector<2x32xf32>
    %29 = arith.negf %28 : vector<2x32xf32>
    %30 = math.exp %29 : vector<2x32xf32>
    %cst_13 = arith.constant 1.000000e+00 : f32
    %31 = vector.broadcast %cst_13 : f32 to vector<2x32xf32>
    %32 = arith.addf %31, %30 : vector<2x32xf32>
    %33 = arith.divf %31, %32 : vector<2x32xf32>
    %34 = vector.extract_strided_slice %14 {offsets = [0, 64], sizes = [2, 32], strides = [1, 1]} : vector<2x96xf32> to vector<2x32xf32>
    %35 = vector.extract_strided_slice %17 {offsets = [0, 64], sizes = [2, 32], strides = [1, 1]} : vector<2x96xf32> to vector<2x32xf32>
    %36 = arith.mulf %25, %35 : vector<2x32xf32>
    %37 = arith.addf %34, %36 : vector<2x32xf32>
    %38 = math.tanh %37 : vector<2x32xf32>
    %cst_14 = arith.constant 1.000000e+00 : f32
    %39 = vector.broadcast %cst_14 : f32 to vector<2x32xf32>
    %40 = arith.subf %39, %33 : vector<2x32xf32>
    %41 = arith.mulf %40, %38 : vector<2x32xf32>
    %42 = arith.mulf %33, %7 : vector<2x32xf32>
    %43 = arith.addf %41, %42 : vector<2x32xf32>
    %c0_15 = arith.constant 0 : index
    %44 = arith.index_cast %11 : i32 to index
    %c0_16 = arith.constant 0 : index
    %c0_17 = arith.constant 0 : index
    %45 = vector.load %arg6[%c0_15, %44, %c0_16, %c0_17] : memref<1x8x2x32xf32, #tpu.memory_space<vmem>>, vector<1x1x2x32xf32>
    %46 = vector.shape_cast %45 : vector<1x1x2x32xf32> to vector<2x32xf32>
    %47 = vector.shape_cast %43 : vector<2x32xf32> to vector<1x1x2x32xf32>
    tpu.vector_store %arg6[%c0_15, %44, %c0_16, %c0_17], %47 {strides = array<i32>} : memref<1x8x2x32xf32, #tpu.memory_space<vmem>>, vector<1x1x2x32xf32>,
    %c1_i32 = arith.constant 1 : i32
    %c2_i32_18 = arith.constant 2 : i32
    %48 = arith.muli %c2_i32_18, %c1_i32 : i32
    %c7_i32_19 = arith.constant 7 : i32
    %49 = arith.subi %c7_i32_19, %48 : i32
    %50 = arith.muli %arg0, %49 : i32
    %51 = arith.addi %c1_i32, %50 : i32
    %c0_20 = arith.constant 0 : index
    %52 = arith.index_cast %51 : i32 to index
    %c0_21 = arith.constant 0 : index
    %c0_22 = arith.constant 0 : index
    %53 = vector.load %arg2[%c0_20, %52, %c0_21, %c0_22] : memref<1x8x2x96xf32, #tpu.memory_space<vmem>>, vector<1x1x2x96xf32>
    %54 = vector.shape_cast %53 : vector<1x1x2x96xf32> to vector<2x96xf32>
    %cst_23 = arith.constant dense<0.000000e+00> : vector<2x96xf32>
    %55 = tpu.matmul %43, %4, %cst_23 {dimension_numbers = #tpu.dot_dimension_numbers<[1], [0], [0], [1], [0, 0, 1, 1], [], []>} : vector<2x32xf32>, vector<32x96xf32>, vector<2x96xf32> -> vector<2x96xf32>
    %56 = vector.broadcast %6 : vector<1x96xf32> to vector<2x96xf32>
    %57 = arith.addf %55, %56 : vector<2x96xf32>
    %58 = vector.extract_strided_slice %54 {offsets = [0, 0], sizes = [2, 32], strides = [1, 1]} : vector<2x96xf32> to vector<2x32xf32>
    %59 = vector.extract_strided_slice %57 {offsets = [0, 0], sizes = [2, 32], strides = [1, 1]} : vector<2x96xf32> to vector<2x32xf32>
    %60 = arith.addf %58, %59 : vector<2x32xf32>
    %61 = arith.negf %60 : vector<2x32xf32>
    %62 = math.exp %61 : vector<2x32xf32>
    %cst_24 = arith.constant 1.000000e+00 : f32
    %63 = vector.broadcast %cst_24 : f32 to vector<2x32xf32>
    %64 = arith.addf %63, %62 : vector<2x32xf32>
    %65 = arith.divf %63, %64 : vector<2x32xf32>
    %66 = vector.extract_strided_slice %54 {offsets = [0, 32], sizes = [2, 32], strides = [1, 1]} : vector<2x96xf32> to vector<2x32xf32>
    %67 = vector.extract_strided_slice %57 {offsets = [0, 32], sizes = [2, 32], strides = [1, 1]} : vector<2x96xf32> to vector<2x32xf32>
    %68 = arith.addf %66, %67 : vector<2x32xf32>
    %69 = arith.negf %68 : vector<2x32xf32>
    %70 = math.exp %69 : vector<2x32xf32>
    %cst_25 = arith.constant 1.000000e+00 : f32
    %71 = vector.broadcast %cst_25 : f32 to vector<2x32xf32>
    %72 = arith.addf %71, %70 : vector<2x32xf32>
    %73 = arith.divf %71, %72 : vector<2x32xf32>
    %74 = vector.extract_strided_slice %54 {offsets = [0, 64], sizes = [2, 32], strides = [1, 1]} : vector<2x96xf32> to vector<2x32xf32>
    %75 = vector.extract_strided_slice %57 {offsets = [0, 64], sizes = [2, 32], strides = [1, 1]} : vector<2x96xf32> to vector<2x32xf32>
    %76 = arith.mulf %65, %75 : vector<2x32xf32>
    %77 = arith.addf %74, %76 : vector<2x32xf32>
    %78 = math.tanh %77 : vector<2x32xf32>
    %cst_26 = arith.constant 1.000000e+00 : f32
    %79 = vector.broadcast %cst_26 : f32 to vector<2x32xf32>
    %80 = arith.subf %79, %73 : vector<2x32xf32>
    %81 = arith.mulf %80, %78 : vector<2x32xf32>
    %82 = arith.mulf %73, %43 : vector<2x32xf32>
    %83 = arith.addf %81, %82 : vector<2x32xf32>
    %c0_27 = arith.constant 0 : index
    %84 = arith.index_cast %51 : i32 to index
    %c0_28 = arith.constant 0 : index
    %c0_29 = arith.constant 0 : index
    %85 = vector.load %arg6[%c0_27, %84, %c0_28, %c0_29] : memref<1x8x2x32xf32, #tpu.memory_space<vmem>>, vector<1x1x2x32xf32>
    %86 = vector.shape_cast %85 : vector<1x1x2x32xf32> to vector<2x32xf32>
    %87 = vector.shape_cast %83 : vector<2x32xf32> to vector<1x1x2x32xf32>
    tpu.vector_store %arg6[%c0_27, %84, %c0_28, %c0_29], %87 {strides = array<i32>} : memref<1x8x2x32xf32, #tpu.memory_space<vmem>>, vector<1x1x2x32xf32>,
    %c2_i32_30 = arith.constant 2 : i32
    %c2_i32_31 = arith.constant 2 : i32
    %88 = arith.muli %c2_i32_31, %c2_i32_30 : i32
    %c7_i32_32 = arith.constant 7 : i32
    %89 = arith.subi %c7_i32_32, %88 : i32
    %90 = arith.muli %arg0, %89 : i32
    %91 = arith.addi %c2_i32_30, %90 : i32
    %c0_33 = arith.constant 0 : index
    %92 = arith.index_cast %91 : i32 to index
    %c0_34 = arith.constant 0 : index
    %c0_35 = arith.constant 0 : index
    %93 = vector.load %arg2[%c0_33, %92, %c0_34, %c0_35] : memref<1x8x2x96xf32, #tpu.memory_space<vmem>>, vector<1x1x2x96xf32>
    %94 = vector.shape_cast %93 : vector<1x1x2x96xf32> to vector<2x96xf32>
    %cst_36 = arith.constant dense<0.000000e+00> : vector<2x96xf32>
    %95 = tpu.matmul %83, %4, %cst_36 {dimension_numbers = #tpu.dot_dimension_numbers<[1], [0], [0], [1], [0, 0, 1, 1], [], []>} : vector<2x32xf32>, vector<32x96xf32>, vector<2x96xf32> -> vector<2x96xf32>
    %96 = vector.broadcast %6 : vector<1x96xf32> to vector<2x96xf32>
    %97 = arith.addf %95, %96 : vector<2x96xf32>
    %98 = vector.extract_strided_slice %94 {offsets = [0, 0], sizes = [2, 32], strides = [1, 1]} : vector<2x96xf32> to vector<2x32xf32>
    %99 = vector.extract_strided_slice %97 {offsets = [0, 0], sizes = [2, 32], strides = [1, 1]} : vector<2x96xf32> to vector<2x32xf32>
    %100 = arith.addf %98, %99 : vector<2x32xf32>
    %101 = arith.negf %100 : vector<2x32xf32>
    %102 = math.exp %101 : vector<2x32xf32>
    %cst_37 = arith.constant 1.000000e+00 : f32
    %103 = vector.broadcast %cst_37 : f32 to vector<2x32xf32>
    %104 = arith.addf %103, %102 : vector<2x32xf32>
    %105 = arith.divf %103, %104 : vector<2x32xf32>
    %106 = vector.extract_strided_slice %94 {offsets = [0, 32], sizes = [2, 32], strides = [1, 1]} : vector<2x96xf32> to vector<2x32xf32>
    %107 = vector.extract_strided_slice %97 {offsets = [0, 32], sizes = [2, 32], strides = [1, 1]} : vector<2x96xf32> to vector<2x32xf32>
    %108 = arith.addf %106, %107 : vector<2x32xf32>
    %109 = arith.negf %108 : vector<2x32xf32>
    %110 = math.exp %109 : vector<2x32xf32>
    %cst_38 = arith.constant 1.000000e+00 : f32
    %111 = vector.broadcast %cst_38 : f32 to vector<2x32xf32>
    %112 = arith.addf %111, %110 : vector<2x32xf32>
    %113 = arith.divf %111, %112 : vector<2x32xf32>
    %114 = vector.extract_strided_slice %94 {offsets = [0, 64], sizes = [2, 32], strides = [1, 1]} : vector<2x96xf32> to vector<2x32xf32>
    %115 = vector.extract_strided_slice %97 {offsets = [0, 64], sizes = [2, 32], strides = [1, 1]} : vector<2x96xf32> to vector<2x32xf32>
    %116 = arith.mulf %105, %115 : vector<2x32xf32>
    %117 = arith.addf %114, %116 : vector<2x32xf32>
    %118 = math.tanh %117 : vector<2x32xf32>
    %cst_39 = arith.constant 1.000000e+00 : f32
    %119 = vector.broadcast %cst_39 : f32 to vector<2x32xf32>
    %120 = arith.subf %119, %113 : vector<2x32xf32>
    %121 = arith.mulf %120, %118 : vector<2x32xf32>
    %122 = arith.mulf %113, %83 : vector<2x32xf32>
    %123 = arith.addf %121, %122 : vector<2x32xf32>
    %c0_40 = arith.constant 0 : index
    %124 = arith.index_cast %91 : i32 to index
    %c0_41 = arith.constant 0 : index
    %c0_42 = arith.constant 0 : index
    %125 = vector.load %arg6[%c0_40, %124, %c0_41, %c0_42] : memref<1x8x2x32xf32, #tpu.memory_space<vmem>>, vector<1x1x2x32xf32>
    %126 = vector.shape_cast %125 : vector<1x1x2x32xf32> to vector<2x32xf32>
    %127 = vector.shape_cast %123 : vector<2x32xf32> to vector<1x1x2x32xf32>
    tpu.vector_store %arg6[%c0_40, %124, %c0_41, %c0_42], %127 {strides = array<i32>} : memref<1x8x2x32xf32, #tpu.memory_space<vmem>>, vector<1x1x2x32xf32>,
    %c3_i32 = arith.constant 3 : i32
    %c2_i32_43 = arith.constant 2 : i32
    %128 = arith.muli %c2_i32_43, %c3_i32 : i32
    %c7_i32_44 = arith.constant 7 : i32
    %129 = arith.subi %c7_i32_44, %128 : i32
    %130 = arith.muli %arg0, %129 : i32
    %131 = arith.addi %c3_i32, %130 : i32
    %c0_45 = arith.constant 0 : index
    %132 = arith.index_cast %131 : i32 to index
    %c0_46 = arith.constant 0 : index
    %c0_47 = arith.constant 0 : index
    %133 = vector.load %arg2[%c0_45, %132, %c0_46, %c0_47] : memref<1x8x2x96xf32, #tpu.memory_space<vmem>>, vector<1x1x2x96xf32>
    %134 = vector.shape_cast %133 : vector<1x1x2x96xf32> to vector<2x96xf32>
    %cst_48 = arith.constant dense<0.000000e+00> : vector<2x96xf32>
    %135 = tpu.matmul %123, %4, %cst_48 {dimension_numbers = #tpu.dot_dimension_numbers<[1], [0], [0], [1], [0, 0, 1, 1], [], []>} : vector<2x32xf32>, vector<32x96xf32>, vector<2x96xf32> -> vector<2x96xf32>
    %136 = vector.broadcast %6 : vector<1x96xf32> to vector<2x96xf32>
    %137 = arith.addf %135, %136 : vector<2x96xf32>
    %138 = vector.extract_strided_slice %134 {offsets = [0, 0], sizes = [2, 32], strides = [1, 1]} : vector<2x96xf32> to vector<2x32xf32>
    %139 = vector.extract_strided_slice %137 {offsets = [0, 0], sizes = [2, 32], strides = [1, 1]} : vector<2x96xf32> to vector<2x32xf32>
    %140 = arith.addf %138, %139 : vector<2x32xf32>
    %141 = arith.negf %140 : vector<2x32xf32>
    %142 = math.exp %141 : vector<2x32xf32>
    %cst_49 = arith.constant 1.000000e+00 : f32
    %143 = vector.broadcast %cst_49 : f32 to vector<2x32xf32>
    %144 = arith.addf %143, %142 : vector<2x32xf32>
    %145 = arith.divf %143, %144 : vector<2x32xf32>
    %146 = vector.extract_strided_slice %134 {offsets = [0, 32], sizes = [2, 32], strides = [1, 1]} : vector<2x96xf32> to vector<2x32xf32>
    %147 = vector.extract_strided_slice %137 {offsets = [0, 32], sizes = [2, 32], strides = [1, 1]} : vector<2x96xf32> to vector<2x32xf32>
    %148 = arith.addf %146, %147 : vector<2x32xf32>
    %149 = arith.negf %148 : vector<2x32xf32>
    %150 = math.exp %149 : vector<2x32xf32>
    %cst_50 = arith.constant 1.000000e+00 : f32
    %151 = vector.broadcast %cst_50 : f32 to vector<2x32xf32>
    %152 = arith.addf %151, %150 : vector<2x32xf32>
    %153 = arith.divf %151, %152 : vector<2x32xf32>
    %154 = vector.extract_strided_slice %134 {offsets = [0, 64], sizes = [2, 32], strides = [1, 1]} : vector<2x96xf32> to vector<2x32xf32>
    %155 = vector.extract_strided_slice %137 {offsets = [0, 64], sizes = [2, 32], strides = [1, 1]} : vector<2x96xf32> to vector<2x32xf32>
    %156 = arith.mulf %145, %155 : vector<2x32xf32>
    %157 = arith.addf %154, %156 : vector<2x32xf32>
    %158 = math.tanh %157 : vector<2x32xf32>
    %cst_51 = arith.constant 1.000000e+00 : f32
    %159 = vector.broadcast %cst_51 : f32 to vector<2x32xf32>
    %160 = arith.subf %159, %153 : vector<2x32xf32>
    %161 = arith.mulf %160, %158 : vector<2x32xf32>
    %162 = arith.mulf %153, %123 : vector<2x32xf32>
    %163 = arith.addf %161, %162 : vector<2x32xf32>
    %c0_52 = arith.constant 0 : index
    %164 = arith.index_cast %131 : i32 to index
    %c0_53 = arith.constant 0 : index
    %c0_54 = arith.constant 0 : index
    %165 = vector.load %arg6[%c0_52, %164, %c0_53, %c0_54] : memref<1x8x2x32xf32, #tpu.memory_space<vmem>>, vector<1x1x2x32xf32>
    %166 = vector.shape_cast %165 : vector<1x1x2x32xf32> to vector<2x32xf32>
    %167 = vector.shape_cast %163 : vector<2x32xf32> to vector<1x1x2x32xf32>
    tpu.vector_store %arg6[%c0_52, %164, %c0_53, %c0_54], %167 {strides = array<i32>} : memref<1x8x2x32xf32, #tpu.memory_space<vmem>>, vector<1x1x2x32xf32>,
    %c4_i32 = arith.constant 4 : i32
    %c2_i32_55 = arith.constant 2 : i32
    %168 = arith.muli %c2_i32_55, %c4_i32 : i32
    %c7_i32_56 = arith.constant 7 : i32
    %169 = arith.subi %c7_i32_56, %168 : i32
    %170 = arith.muli %arg0, %169 : i32
    %171 = arith.addi %c4_i32, %170 : i32
    %c0_57 = arith.constant 0 : index
    %172 = arith.index_cast %171 : i32 to index
    %c0_58 = arith.constant 0 : index
    %c0_59 = arith.constant 0 : index
    %173 = vector.load %arg2[%c0_57, %172, %c0_58, %c0_59] : memref<1x8x2x96xf32, #tpu.memory_space<vmem>>, vector<1x1x2x96xf32>
    %174 = vector.shape_cast %173 : vector<1x1x2x96xf32> to vector<2x96xf32>
    %cst_60 = arith.constant dense<0.000000e+00> : vector<2x96xf32>
    %175 = tpu.matmul %163, %4, %cst_60 {dimension_numbers = #tpu.dot_dimension_numbers<[1], [0], [0], [1], [0, 0, 1, 1], [], []>} : vector<2x32xf32>, vector<32x96xf32>, vector<2x96xf32> -> vector<2x96xf32>
    %176 = vector.broadcast %6 : vector<1x96xf32> to vector<2x96xf32>
    %177 = arith.addf %175, %176 : vector<2x96xf32>
    %178 = vector.extract_strided_slice %174 {offsets = [0, 0], sizes = [2, 32], strides = [1, 1]} : vector<2x96xf32> to vector<2x32xf32>
    %179 = vector.extract_strided_slice %177 {offsets = [0, 0], sizes = [2, 32], strides = [1, 1]} : vector<2x96xf32> to vector<2x32xf32>
    %180 = arith.addf %178, %179 : vector<2x32xf32>
    %181 = arith.negf %180 : vector<2x32xf32>
    %182 = math.exp %181 : vector<2x32xf32>
    %cst_61 = arith.constant 1.000000e+00 : f32
    %183 = vector.broadcast %cst_61 : f32 to vector<2x32xf32>
    %184 = arith.addf %183, %182 : vector<2x32xf32>
    %185 = arith.divf %183, %184 : vector<2x32xf32>
    %186 = vector.extract_strided_slice %174 {offsets = [0, 32], sizes = [2, 32], strides = [1, 1]} : vector<2x96xf32> to vector<2x32xf32>
    %187 = vector.extract_strided_slice %177 {offsets = [0, 32], sizes = [2, 32], strides = [1, 1]} : vector<2x96xf32> to vector<2x32xf32>
    %188 = arith.addf %186, %187 : vector<2x32xf32>
    %189 = arith.negf %188 : vector<2x32xf32>
    %190 = math.exp %189 : vector<2x32xf32>
    %cst_62 = arith.constant 1.000000e+00 : f32
    %191 = vector.broadcast %cst_62 : f32 to vector<2x32xf32>
    %192 = arith.addf %191, %190 : vector<2x32xf32>
    %193 = arith.divf %191, %192 : vector<2x32xf32>
    %194 = vector.extract_strided_slice %174 {offsets = [0, 64], sizes = [2, 32], strides = [1, 1]} : vector<2x96xf32> to vector<2x32xf32>
    %195 = vector.extract_strided_slice %177 {offsets = [0, 64], sizes = [2, 32], strides = [1, 1]} : vector<2x96xf32> to vector<2x32xf32>
    %196 = arith.mulf %185, %195 : vector<2x32xf32>
    %197 = arith.addf %194, %196 : vector<2x32xf32>
    %198 = math.tanh %197 : vector<2x32xf32>
    %cst_63 = arith.constant 1.000000e+00 : f32
    %199 = vector.broadcast %cst_63 : f32 to vector<2x32xf32>
    %200 = arith.subf %199, %193 : vector<2x32xf32>
    %201 = arith.mulf %200, %198 : vector<2x32xf32>
    %202 = arith.mulf %193, %163 : vector<2x32xf32>
    %203 = arith.addf %201, %202 : vector<2x32xf32>
    %c0_64 = arith.constant 0 : index
    %204 = arith.index_cast %171 : i32 to index
    %c0_65 = arith.constant 0 : index
    %c0_66 = arith.constant 0 : index
    %205 = vector.load %arg6[%c0_64, %204, %c0_65, %c0_66] : memref<1x8x2x32xf32, #tpu.memory_space<vmem>>, vector<1x1x2x32xf32>
    %206 = vector.shape_cast %205 : vector<1x1x2x32xf32> to vector<2x32xf32>
    %207 = vector.shape_cast %203 : vector<2x32xf32> to vector<1x1x2x32xf32>
    tpu.vector_store %arg6[%c0_64, %204, %c0_65, %c0_66], %207 {strides = array<i32>} : memref<1x8x2x32xf32, #tpu.memory_space<vmem>>, vector<1x1x2x32xf32>,
    %c5_i32 = arith.constant 5 : i32
    %c2_i32_67 = arith.constant 2 : i32
    %208 = arith.muli %c2_i32_67, %c5_i32 : i32
    %c7_i32_68 = arith.constant 7 : i32
    %209 = arith.subi %c7_i32_68, %208 : i32
    %210 = arith.muli %arg0, %209 : i32
    %211 = arith.addi %c5_i32, %210 : i32
    %c0_69 = arith.constant 0 : index
    %212 = arith.index_cast %211 : i32 to index
    %c0_70 = arith.constant 0 : index
    %c0_71 = arith.constant 0 : index
    %213 = vector.load %arg2[%c0_69, %212, %c0_70, %c0_71] : memref<1x8x2x96xf32, #tpu.memory_space<vmem>>, vector<1x1x2x96xf32>
    %214 = vector.shape_cast %213 : vector<1x1x2x96xf32> to vector<2x96xf32>
    %cst_72 = arith.constant dense<0.000000e+00> : vector<2x96xf32>
    %215 = tpu.matmul %203, %4, %cst_72 {dimension_numbers = #tpu.dot_dimension_numbers<[1], [0], [0], [1], [0, 0, 1, 1], [], []>} : vector<2x32xf32>, vector<32x96xf32>, vector<2x96xf32> -> vector<2x96xf32>
    %216 = vector.broadcast %6 : vector<1x96xf32> to vector<2x96xf32>
    %217 = arith.addf %215, %216 : vector<2x96xf32>
    %218 = vector.extract_strided_slice %214 {offsets = [0, 0], sizes = [2, 32], strides = [1, 1]} : vector<2x96xf32> to vector<2x32xf32>
    %219 = vector.extract_strided_slice %217 {offsets = [0, 0], sizes = [2, 32], strides = [1, 1]} : vector<2x96xf32> to vector<2x32xf32>
    %220 = arith.addf %218, %219 : vector<2x32xf32>
    %221 = arith.negf %220 : vector<2x32xf32>
    %222 = math.exp %221 : vector<2x32xf32>
    %cst_73 = arith.constant 1.000000e+00 : f32
    %223 = vector.broadcast %cst_73 : f32 to vector<2x32xf32>
    %224 = arith.addf %223, %222 : vector<2x32xf32>
    %225 = arith.divf %223, %224 : vector<2x32xf32>
    %226 = vector.extract_strided_slice %214 {offsets = [0, 32], sizes = [2, 32], strides = [1, 1]} : vector<2x96xf32> to vector<2x32xf32>
    %227 = vector.extract_strided_slice %217 {offsets = [0, 32], sizes = [2, 32], strides = [1, 1]} : vector<2x96xf32> to vector<2x32xf32>
    %228 = arith.addf %226, %227 : vector<2x32xf32>
    %229 = arith.negf %228 : vector<2x32xf32>
    %230 = math.exp %229 : vector<2x32xf32>
    %cst_74 = arith.constant 1.000000e+00 : f32
    %231 = vector.broadcast %cst_74 : f32 to vector<2x32xf32>
    %232 = arith.addf %231, %230 : vector<2x32xf32>
    %233 = arith.divf %231, %232 : vector<2x32xf32>
    %234 = vector.extract_strided_slice %214 {offsets = [0, 64], sizes = [2, 32], strides = [1, 1]} : vector<2x96xf32> to vector<2x32xf32>
    %235 = vector.extract_strided_slice %217 {offsets = [0, 64], sizes = [2, 32], strides = [1, 1]} : vector<2x96xf32> to vector<2x32xf32>
    %236 = arith.mulf %225, %235 : vector<2x32xf32>
    %237 = arith.addf %234, %236 : vector<2x32xf32>
    %238 = math.tanh %237 : vector<2x32xf32>
    %cst_75 = arith.constant 1.000000e+00 : f32
    %239 = vector.broadcast %cst_75 : f32 to vector<2x32xf32>
    %240 = arith.subf %239, %233 : vector<2x32xf32>
    %241 = arith.mulf %240, %238 : vector<2x32xf32>
    %242 = arith.mulf %233, %203 : vector<2x32xf32>
    %243 = arith.addf %241, %242 : vector<2x32xf32>
    %c0_76 = arith.constant 0 : index
    %244 = arith.index_cast %211 : i32 to index
    %c0_77 = arith.constant 0 : index
    %c0_78 = arith.constant 0 : index
    %245 = vector.load %arg6[%c0_76, %244, %c0_77, %c0_78] : memref<1x8x2x32xf32, #tpu.memory_space<vmem>>, vector<1x1x2x32xf32>
    %246 = vector.shape_cast %245 : vector<1x1x2x32xf32> to vector<2x32xf32>
    %247 = vector.shape_cast %243 : vector<2x32xf32> to vector<1x1x2x32xf32>
    tpu.vector_store %arg6[%c0_76, %244, %c0_77, %c0_78], %247 {strides = array<i32>} : memref<1x8x2x32xf32, #tpu.memory_space<vmem>>, vector<1x1x2x32xf32>,
    %c6_i32 = arith.constant 6 : i32
    %c2_i32_79 = arith.constant 2 : i32
    %248 = arith.muli %c2_i32_79, %c6_i32 : i32
    %c7_i32_80 = arith.constant 7 : i32
    %249 = arith.subi %c7_i32_80, %248 : i32
    %250 = arith.muli %arg0, %249 : i32
    %251 = arith.addi %c6_i32, %250 : i32
    %c0_81 = arith.constant 0 : index
    %252 = arith.index_cast %251 : i32 to index
    %c0_82 = arith.constant 0 : index
    %c0_83 = arith.constant 0 : index
    %253 = vector.load %arg2[%c0_81, %252, %c0_82, %c0_83] : memref<1x8x2x96xf32, #tpu.memory_space<vmem>>, vector<1x1x2x96xf32>
    %254 = vector.shape_cast %253 : vector<1x1x2x96xf32> to vector<2x96xf32>
    %cst_84 = arith.constant dense<0.000000e+00> : vector<2x96xf32>
    %255 = tpu.matmul %243, %4, %cst_84 {dimension_numbers = #tpu.dot_dimension_numbers<[1], [0], [0], [1], [0, 0, 1, 1], [], []>} : vector<2x32xf32>, vector<32x96xf32>, vector<2x96xf32> -> vector<2x96xf32>
    %256 = vector.broadcast %6 : vector<1x96xf32> to vector<2x96xf32>
    %257 = arith.addf %255, %256 : vector<2x96xf32>
    %258 = vector.extract_strided_slice %254 {offsets = [0, 0], sizes = [2, 32], strides = [1, 1]} : vector<2x96xf32> to vector<2x32xf32>
    %259 = vector.extract_strided_slice %257 {offsets = [0, 0], sizes = [2, 32], strides = [1, 1]} : vector<2x96xf32> to vector<2x32xf32>
    %260 = arith.addf %258, %259 : vector<2x32xf32>
    %261 = arith.negf %260 : vector<2x32xf32>
    %262 = math.exp %261 : vector<2x32xf32>
    %cst_85 = arith.constant 1.000000e+00 : f32
    %263 = vector.broadcast %cst_85 : f32 to vector<2x32xf32>
    %264 = arith.addf %263, %262 : vector<2x32xf32>
    %265 = arith.divf %263, %264 : vector<2x32xf32>
    %266 = vector.extract_strided_slice %254 {offsets = [0, 32], sizes = [2, 32], strides = [1, 1]} : vector<2x96xf32> to vector<2x32xf32>
    %267 = vector.extract_strided_slice %257 {offsets = [0, 32], sizes = [2, 32], strides = [1, 1]} : vector<2x96xf32> to vector<2x32xf32>
    %268 = arith.addf %266, %267 : vector<2x32xf32>
    %269 = arith.negf %268 : vector<2x32xf32>
    %270 = math.exp %269 : vector<2x32xf32>
    %cst_86 = arith.constant 1.000000e+00 : f32
    %271 = vector.broadcast %cst_86 : f32 to vector<2x32xf32>
    %272 = arith.addf %271, %270 : vector<2x32xf32>
    %273 = arith.divf %271, %272 : vector<2x32xf32>
    %274 = vector.extract_strided_slice %254 {offsets = [0, 64], sizes = [2, 32], strides = [1, 1]} : vector<2x96xf32> to vector<2x32xf32>
    %275 = vector.extract_strided_slice %257 {offsets = [0, 64], sizes = [2, 32], strides = [1, 1]} : vector<2x96xf32> to vector<2x32xf32>
    %276 = arith.mulf %265, %275 : vector<2x32xf32>
    %277 = arith.addf %274, %276 : vector<2x32xf32>
    %278 = math.tanh %277 : vector<2x32xf32>
    %cst_87 = arith.constant 1.000000e+00 : f32
    %279 = vector.broadcast %cst_87 : f32 to vector<2x32xf32>
    %280 = arith.subf %279, %273 : vector<2x32xf32>
    %281 = arith.mulf %280, %278 : vector<2x32xf32>
    %282 = arith.mulf %273, %243 : vector<2x32xf32>
    %283 = arith.addf %281, %282 : vector<2x32xf32>
    %c0_88 = arith.constant 0 : index
    %284 = arith.index_cast %251 : i32 to index
    %c0_89 = arith.constant 0 : index
    %c0_90 = arith.constant 0 : index
    %285 = vector.load %arg6[%c0_88, %284, %c0_89, %c0_90] : memref<1x8x2x32xf32, #tpu.memory_space<vmem>>, vector<1x1x2x32xf32>
    %286 = vector.shape_cast %285 : vector<1x1x2x32xf32> to vector<2x32xf32>
    %287 = vector.shape_cast %283 : vector<2x32xf32> to vector<1x1x2x32xf32>
    tpu.vector_store %arg6[%c0_88, %284, %c0_89, %c0_90], %287 {strides = array<i32>} : memref<1x8x2x32xf32, #tpu.memory_space<vmem>>, vector<1x1x2x32xf32>,
    %c7_i32_91 = arith.constant 7 : i32
    %c2_i32_92 = arith.constant 2 : i32
    %288 = arith.muli %c2_i32_92, %c7_i32_91 : i32
    %c7_i32_93 = arith.constant 7 : i32
    %289 = arith.subi %c7_i32_93, %288 : i32
    %290 = arith.muli %arg0, %289 : i32
    %291 = arith.addi %c7_i32_91, %290 : i32
    %c0_94 = arith.constant 0 : index
    %292 = arith.index_cast %291 : i32 to index
    %c0_95 = arith.constant 0 : index
    %c0_96 = arith.constant 0 : index
    %293 = vector.load %arg2[%c0_94, %292, %c0_95, %c0_96] : memref<1x8x2x96xf32, #tpu.memory_space<vmem>>, vector<1x1x2x96xf32>
    %294 = vector.shape_cast %293 : vector<1x1x2x96xf32> to vector<2x96xf32>
    %cst_97 = arith.constant dense<0.000000e+00> : vector<2x96xf32>
    %295 = tpu.matmul %283, %4, %cst_97 {dimension_numbers = #tpu.dot_dimension_numbers<[1], [0], [0], [1], [0, 0, 1, 1], [], []>} : vector<2x32xf32>, vector<32x96xf32>, vector<2x96xf32> -> vector<2x96xf32>
    %296 = vector.broadcast %6 : vector<1x96xf32> to vector<2x96xf32>
    %297 = arith.addf %295, %296 : vector<2x96xf32>
    %298 = vector.extract_strided_slice %294 {offsets = [0, 0], sizes = [2, 32], strides = [1, 1]} : vector<2x96xf32> to vector<2x32xf32>
    %299 = vector.extract_strided_slice %297 {offsets = [0, 0], sizes = [2, 32], strides = [1, 1]} : vector<2x96xf32> to vector<2x32xf32>
    %300 = arith.addf %298, %299 : vector<2x32xf32>
    %301 = arith.negf %300 : vector<2x32xf32>
    %302 = math.exp %301 : vector<2x32xf32>
    %cst_98 = arith.constant 1.000000e+00 : f32
    %303 = vector.broadcast %cst_98 : f32 to vector<2x32xf32>
    %304 = arith.addf %303, %302 : vector<2x32xf32>
    %305 = arith.divf %303, %304 : vector<2x32xf32>
    %306 = vector.extract_strided_slice %294 {offsets = [0, 32], sizes = [2, 32], strides = [1, 1]} : vector<2x96xf32> to vector<2x32xf32>
    %307 = vector.extract_strided_slice %297 {offsets = [0, 32], sizes = [2, 32], strides = [1, 1]} : vector<2x96xf32> to vector<2x32xf32>
    %308 = arith.addf %306, %307 : vector<2x32xf32>
    %309 = arith.negf %308 : vector<2x32xf32>
    %310 = math.exp %309 : vector<2x32xf32>
    %cst_99 = arith.constant 1.000000e+00 : f32
    %311 = vector.broadcast %cst_99 : f32 to vector<2x32xf32>
    %312 = arith.addf %311, %310 : vector<2x32xf32>
    %313 = arith.divf %311, %312 : vector<2x32xf32>
    %314 = vector.extract_strided_slice %294 {offsets = [0, 64], sizes = [2, 32], strides = [1, 1]} : vector<2x96xf32> to vector<2x32xf32>
    %315 = vector.extract_strided_slice %297 {offsets = [0, 64], sizes = [2, 32], strides = [1, 1]} : vector<2x96xf32> to vector<2x32xf32>
    %316 = arith.mulf %305, %315 : vector<2x32xf32>
    %317 = arith.addf %314, %316 : vector<2x32xf32>
    %318 = math.tanh %317 : vector<2x32xf32>
    %cst_100 = arith.constant 1.000000e+00 : f32
    %319 = vector.broadcast %cst_100 : f32 to vector<2x32xf32>
    %320 = arith.subf %319, %313 : vector<2x32xf32>
    %321 = arith.mulf %320, %318 : vector<2x32xf32>
    %322 = arith.mulf %313, %283 : vector<2x32xf32>
    %323 = arith.addf %321, %322 : vector<2x32xf32>
    %c0_101 = arith.constant 0 : index
    %324 = arith.index_cast %291 : i32 to index
    %c0_102 = arith.constant 0 : index
    %c0_103 = arith.constant 0 : index
    %325 = vector.load %arg6[%c0_101, %324, %c0_102, %c0_103] : memref<1x8x2x32xf32, #tpu.memory_space<vmem>>, vector<1x1x2x32xf32>
    %326 = vector.shape_cast %325 : vector<1x1x2x32xf32> to vector<2x32xf32>
    %327 = vector.shape_cast %323 : vector<2x32xf32> to vector<1x1x2x32xf32>
    tpu.vector_store %arg6[%c0_101, %324, %c0_102, %c0_103], %327 {strides = array<i32>} : memref<1x8x2x32xf32, #tpu.memory_space<vmem>>, vector<1x1x2x32xf32>,
    %c8_i32 = arith.constant 8 : i32
    %c0_104 = arith.constant 0 : index
    %c0_105 = arith.constant 0 : index
    %328 = vector.load %arg7[%c0_104, %c0_105] : memref<2x32xf32, #tpu.memory_space<vmem>>, vector<2x32xf32>
    tpu.vector_store %arg7[%c0_104, %c0_105], %323 {strides = array<i32>} : memref<2x32xf32, #tpu.memory_space<vmem>>, vector<2x32xf32>,
    return
  }
  func.func @transform_0(%arg0: i32, %arg1: i32) -> (i32, i32, i32, i32) {
    %c2_i32 = arith.constant 2 : i32
    %0 = arith.muli %c2_i32, %arg1 : i32
    %c0_i32 = arith.constant 0 : i32
    %1 = arith.subi %c0_i32, %0 : i32
    %2 = arith.muli %arg0, %1 : i32
    %3 = arith.addi %arg1, %2 : i32
    %c0_i32_0 = arith.constant 0 : i32
    %c0_i32_1 = arith.constant 0 : i32
    %c0_i32_2 = arith.constant 0 : i32
    return %arg0, %3, %c0_i32_0, %c0_i32_1 : i32, i32, i32, i32
  }
  func.func @transform_1(%arg0: i32, %arg1: i32) -> (i32, i32, i32) {
    %c0_i32 = arith.constant 0 : i32
    %c0_i32_0 = arith.constant 0 : i32
    %c0_i32_1 = arith.constant 0 : i32
    return %arg0, %c0_i32, %c0_i32_0 : i32, i32, i32
  }
  func.func @transform_2(%arg0: i32, %arg1: i32) -> (i32, i32, i32) {
    %c0_i32 = arith.constant 0 : i32
    %c0_i32_0 = arith.constant 0 : i32
    %c0_i32_1 = arith.constant 0 : i32
    return %arg0, %c0_i32, %c0_i32_0 : i32, i32, i32
  }
  func.func @transform_3(%arg0: i32, %arg1: i32) -> (i32, i32, i32) {
    %c0_i32 = arith.constant 0 : i32
    %c0_i32_0 = arith.constant 0 : i32
    %c0_i32_1 = arith.constant 0 : i32
    return %arg0, %c0_i32, %c0_i32_0 : i32, i32, i32
  }
  func.func @transform_4(%arg0: i32, %arg1: i32) -> (i32, i32, i32, i32) {
    %c2_i32 = arith.constant 2 : i32
    %0 = arith.muli %c2_i32, %arg1 : i32
    %c0_i32 = arith.constant 0 : i32
    %1 = arith.subi %c0_i32, %0 : i32
    %2 = arith.muli %arg0, %1 : i32
    %3 = arith.addi %arg1, %2 : i32
    %c0_i32_0 = arith.constant 0 : i32
    %c0_i32_1 = arith.constant 0 : i32
    %c0_i32_2 = arith.constant 0 : i32
    return %arg0, %3, %c0_i32_0, %c0_i32_1 : i32, i32, i32, i32
  }
}

module attributes {stable_mosaic.version = 11 : i64} {
  func.func @_head_kernel(%arg0: i32, %arg1: memref<1x2x8x32xf32, #tpu.memory_space<vmem>>, %arg2: memref<2x32x5xf32, #tpu.memory_space<vmem>>, %arg3: memref<1x5xf32, #tpu.memory_space<vmem>>, %arg4: memref<1x8x5xf32, #tpu.memory_space<vmem>>) attributes {dimension_semantics = [#tpu.dimension_semantics<parallel>], iteration_bounds = array<i64: 2>, scalar_prefetch = 0 : i64, scratch_operands = 0 : i64, tpu.core_type = #tpu.core_type<tc>, window_params = [{transform_indices = @transform_0, window_bounds = array<i64: 1, 2, 8, 32>}, {pipeline_mode = #tpu.pipeline_mode<synchronous>, transform_indices = @transform_1, window_bounds = array<i64: 2, 32, 5>}, {pipeline_mode = #tpu.pipeline_mode<synchronous>, transform_indices = @transform_2, window_bounds = array<i64: 1, 5>}, {transform_indices = @transform_3, window_bounds = array<i64: 1, 8, 5>}]} {
    %c0 = arith.constant 0 : index
    %c0_0 = arith.constant 0 : index
    %c0_1 = arith.constant 0 : index
    %c0_2 = arith.constant 0 : index
    %0 = vector.load %arg1[%c0, %c0_0, %c0_1, %c0_2] : memref<1x2x8x32xf32, #tpu.memory_space<vmem>>, vector<1x1x8x32xf32>
    %1 = vector.shape_cast %0 : vector<1x1x8x32xf32> to vector<8x32xf32>
    %c0_3 = arith.constant 0 : index
    %c1 = arith.constant 1 : index
    %c0_4 = arith.constant 0 : index
    %c0_5 = arith.constant 0 : index
    %2 = vector.load %arg1[%c0_3, %c1, %c0_4, %c0_5] : memref<1x2x8x32xf32, #tpu.memory_space<vmem>>, vector<1x1x8x32xf32>
    %3 = vector.shape_cast %2 : vector<1x1x8x32xf32> to vector<8x32xf32>
    %c0_6 = arith.constant 0 : index
    %c0_7 = arith.constant 0 : index
    %c0_8 = arith.constant 0 : index
    %4 = vector.load %arg2[%c0_6, %c0_7, %c0_8] : memref<2x32x5xf32, #tpu.memory_space<vmem>>, vector<1x32x5xf32>
    %5 = vector.shape_cast %4 : vector<1x32x5xf32> to vector<32x5xf32>
    %cst = arith.constant dense<0.000000e+00> : vector<8x5xf32>
    %6 = tpu.matmul %1, %5, %cst {dimension_numbers = #tpu.dot_dimension_numbers<[1], [0], [0], [1], [0, 0, 1, 1], [], []>} : vector<8x32xf32>, vector<32x5xf32>, vector<8x5xf32> -> vector<8x5xf32>
    %c1_9 = arith.constant 1 : index
    %c0_10 = arith.constant 0 : index
    %c0_11 = arith.constant 0 : index
    %7 = vector.load %arg2[%c1_9, %c0_10, %c0_11] : memref<2x32x5xf32, #tpu.memory_space<vmem>>, vector<1x32x5xf32>
    %8 = vector.shape_cast %7 : vector<1x32x5xf32> to vector<32x5xf32>
    %cst_12 = arith.constant dense<0.000000e+00> : vector<8x5xf32>
    %9 = tpu.matmul %3, %8, %cst_12 {dimension_numbers = #tpu.dot_dimension_numbers<[1], [0], [0], [1], [0, 0, 1, 1], [], []>} : vector<8x32xf32>, vector<32x5xf32>, vector<8x5xf32> -> vector<8x5xf32>
    %10 = arith.addf %6, %9 : vector<8x5xf32>
    %c0_13 = arith.constant 0 : index
    %c0_14 = arith.constant 0 : index
    %11 = vector.load %arg3[%c0_13, %c0_14] : memref<1x5xf32, #tpu.memory_space<vmem>>, vector<1x5xf32>
    %12 = vector.broadcast %11 : vector<1x5xf32> to vector<8x5xf32>
    %13 = arith.addf %10, %12 : vector<8x5xf32>
    %cst_15 = arith.constant dense<0xFF800000> : vector<5xf32>
    %14 = vector.multi_reduction <maximumf>, %13, %cst_15 [0] : vector<8x5xf32> to vector<5xf32>
    %15 = vector.shape_cast %14 : vector<5xf32> to vector<1x5xf32>
    %16 = vector.broadcast %15 : vector<1x5xf32> to vector<8x5xf32>
    %17 = arith.subf %13, %16 : vector<8x5xf32>
    %18 = math.exp %17 : vector<8x5xf32>
    %cst_16 = arith.constant dense<0.000000e+00> : vector<5xf32>
    %19 = vector.multi_reduction <add>, %18, %cst_16 [0] : vector<8x5xf32> to vector<5xf32>
    %20 = vector.shape_cast %19 : vector<5xf32> to vector<1x5xf32>
    %21 = math.log %20 : vector<1x5xf32>
    %22 = arith.addf %21, %15 : vector<1x5xf32>
    %23 = vector.broadcast %22 : vector<1x5xf32> to vector<8x5xf32>
    %24 = arith.subf %13, %23 : vector<8x5xf32>
    %c0_17 = arith.constant 0 : index
    %c0_18 = arith.constant 0 : index
    %c0_19 = arith.constant 0 : index
    %25 = vector.load %arg4[%c0_17, %c0_18, %c0_19] : memref<1x8x5xf32, #tpu.memory_space<vmem>>, vector<1x8x5xf32>
    %26 = vector.shape_cast %25 : vector<1x8x5xf32> to vector<8x5xf32>
    %27 = vector.shape_cast %24 : vector<8x5xf32> to vector<1x8x5xf32>
    tpu.vector_store %arg4[%c0_17, %c0_18, %c0_19], %27 {strides = array<i32>} : memref<1x8x5xf32, #tpu.memory_space<vmem>>, vector<1x8x5xf32>,
    return
  }
  func.func @transform_0(%arg0: i32) -> (i32, i32, i32, i32) {
    %c0_i32 = arith.constant 0 : i32
    %c0_i32_0 = arith.constant 0 : i32
    %c0_i32_1 = arith.constant 0 : i32
    %c0_i32_2 = arith.constant 0 : i32
    return %arg0, %c0_i32, %c0_i32_0, %c0_i32_1 : i32, i32, i32, i32
  }
  func.func @transform_1(%arg0: i32) -> (i32, i32, i32) {
    %c0_i32 = arith.constant 0 : i32
    %c0_i32_0 = arith.constant 0 : i32
    %c0_i32_1 = arith.constant 0 : i32
    %c0_i32_2 = arith.constant 0 : i32
    return %c0_i32, %c0_i32_0, %c0_i32_1 : i32, i32, i32
  }
  func.func @transform_2(%arg0: i32) -> (i32, i32) {
    %c0_i32 = arith.constant 0 : i32
    %c0_i32_0 = arith.constant 0 : i32
    %c0_i32_1 = arith.constant 0 : i32
    return %c0_i32, %c0_i32_0 : i32, i32
  }
  func.func @transform_3(%arg0: i32) -> (i32, i32, i32) {
    %c0_i32 = arith.constant 0 : i32
    %c0_i32_0 = arith.constant 0 : i32
    %c0_i32_1 = arith.constant 0 : i32
    return %arg0, %c0_i32, %c0_i32_0 : i32, i32, i32
  }
}

</mosaic_0001>

<bundles_post_ra>
// kernel: _simple_gru_forward.5
= control target key start
LH: loop header
LB: loop body
LE: loop exit
PB: predicated region body
PF: predicated region fallthrough
CT: control target
= control target key end

     0   :  { %s368_s12 = smov 0   ;;  %s419_s0 = inlined_call_operand.vmem [shape: f32[2,2,8,32], index: 0, kind: input, shape index: {}]   ;;  %s420_s1 = inlined_call_operand.vmem [shape: f32[2,32,5], index: 1, kind: input, shape index: {}]   ;;  %s421_s2 = inlined_call_operand.vmem [shape: f32[1,5], index: 2, kind: input, shape index: {}]   ;;  %s422_s3 = inlined_call_operand.vmem [shape: f32[2,8,5], index: 3, kind: output, shape index: {}]  }
   0x1 LB: > { %s309_s13 = sadd.s32 4294967295, %s346_s12   ;;  %p313_p0 = scmp.ge.s32.totalorder %s346_s12, 1  ;;  %s346_s12 = sphi %s368_s12, %s13_s12  }
   0x2   : > { %p137_p1 = scmp.lt.s32.totalorder %s346_s12, 3 }
   0x4   : > { %p138_p2 = pnand %p313_p0, %p137_p1 }
   0x5   : > { %p160_p3 = scmp.lt.s32.totalorder (!%p138_p2), %s309_s13, 1 }
   0x6   : > { %141 = sbr.rel (%p138_p2) target bundleno = 201 (0xc9), region = 32 }
   0xb   : > { %v321_v0 = vld [vmem:[%s420_s1 + $0x38] sm:$0xff]  ;;  %v320_v2 = vld [vmem:[%s420_s1 + $0x30] sm:$0xff]  ;;  %v319_v4 = vld [vmem:[%s420_s1 + $0x28] sm:$0xff]  ;;  %s424_s13 = smov (!%p160_p3, %s309_s13), 1  ;;  %vm181_vm0 = vcmask 261120   ;;  %vm233_vm1 = vcmask 39936  }
   0xc   : > { %v175_v1 = vld [vmem:[%s420_s1 + $0x18] sm:$0xff]  ;;  %197 = vmatpush.msra.mxu0 %v321_v0  ;;  %v174_v3 = vld [vmem:[%s420_s1 + $0x10] sm:$0xff]  ;;  %v173_v5 = vld [vmem:[%s420_s1 + $0x8] sm:$0xff]  ;;  %s326_s30 = sshll.u32 %s424_s13, 4  ;;  %s316_s9 = sshll.u32 %s424_s13, 3 }
   0xd   : > { %220 = vmatpush.msra.mxu1 %v175_v1  ;;  %v318_v6 = vld [vmem:[%s420_s1 + $0x20] sm:$0xff]  ;;  %s164_s6 = scalar_lea.vmem %s419_s0, %s326_s30  ;;  %s168_s14 = scalar_lea.vmem %s422_s3, %s316_s9 }
   0xe   : > { %198 = vmatpush.msra.mxu0 %v320_v2  ;;  %v172_v7 = vld [vmem:[%s420_s1] sm:$0xff]  ;;  %v317_v8 = vld [vmem:[%s164_s6 + $0x8] sm:$0xff] }
   0xf   : > { %221 = vmatpush.msra.mxu1 %v174_v3  ;;  %v169_v9 = vld [vmem:[%s164_s6] sm:$0xff] }
  0x10   : > { %199 = vmatpush.msra.mxu0 %v319_v4  ;;  %v335_v10 = vld [vmem:[%s421_s2] ss:$0 sm:$0xff] }
  0x11   : > { %222 = vmatpush.msra.mxu1 %v173_v5 }
  0x12   : > { %200 = vmatpush.msra.mxu0 %v318_v6 }
  0x13   : > { %223 = vmatpush.msra.mxu1 %v172_v7  ;;  %322 = vmatmul.msk.f32.vlgmr.msra.gmra.mxu0 %vm181_vm0, %v317_v8 }
  0x14   : > { %323 = vmatmul.msk.f32.vlgmr.msra.gmra.mxu1 %vm181_vm0, %v169_v9 }
  0x90   : > { %v202_v11 = vpop.f32.mrf.mxu0 }
  0x91   : > { %v225_v12 = vpop.f32.mrf.mxu1 }
  0x92   : > { %v226_v13 = vadd.f32 %v225_v12, %v202_v11 }
  0x94   : > { %v232_v14 = vadd.f32 %v335_v10, %v226_v13 }
  0x96   : > { %v234_v15 = vsel %vm233_vm1, %v232_v14, -inf }
  0x97   : > { %v235_v16 = vrot.slane %v234_v15, 4 }
  0x99   : > { %v236_v17 = vmax.f32 %v234_v15, %v235_v16 }
  0x9b   : > { %v237_v18 = vrot.slane %v236_v17, 2 }
  0x9d   : > { %v238_v19 = vmax.f32 %v236_v17, %v237_v18 }
  0x9f   : > { %v239_v20 = vrot.slane %v238_v19, 1 }
  0xa1   : > { %v240_v21 = vmax.f32 %v238_v19, %v239_v20 }
  0xa3   : > { %v241_v22 = vsub.f32 %v232_v14, %v240_v21 }
  0xa5   : > { %v242_v23 = vmul.f32 1.442695, %v241_v22 }
  0xa7   : > { %336 = vpow2.f32 %v242_v23 }
  0xad   : > { %v337_v24 = vpop.eup %336 }
  0xae   : > { %v244_v25 = vsel %vm233_vm1, %v337_v24, 0.0 }
  0xaf   : > { %v245_v26 = vrot.slane %v244_v25, 4 }
  0xb1   : > { %v246_v27 = vadd.f32 %v245_v26, %v244_v25 }
  0xb3   : > { %v247_v28 = vrot.slane %v246_v27, 2 }
  0xb5   : > { %v248_v29 = vadd.f32 %v247_v28, %v246_v27 }
  0xb7   : > { %v249_v30 = vrot.slane %v248_v29, 1 }
  0xb9   : > { %v250_v31 = vadd.f32 %v249_v30, %v248_v29 }
  0xbb   : > { %338 = vlog2.f32 %v250_v31 }
  0xc1   : > { %v339_v32 = vpop.eup %338 }
  0xc2   : > { %v252_v33 = vmul.f32 0.6931472, %v339_v32 }
  0xc4   : > { %v253_v34 = vadd.f32 %v252_v33, %v240_v21 }
  0xc6   : > { %v254_v35 = vsub.f32 %v232_v14, %v253_v34 }
  0xc8   : > { %255 = vst.msk [vmem:[%s168_s14] sm:$0xff] %vm233_vm1, %v254_v35 }
  0xc9 PF: > { %s13_s12 = sadd.s32 1, %s346_s12  }
  0xca   : > { %p10_p4 = scmp.ge.s32.totalorder %s13_s12, 4  }
  0xcc   :  { %12 = sbr.rel (!%p10_p4) target bundleno = 1 (0x1), region = 64 }

// kernel: _simple_gru_forward.3
= control target key start
LH: loop header
LB: loop body
LE: loop exit
PB: predicated region body
PF: predicated region fallthrough
CT: control target
= control target key end

     0   :  { %s1305_s15 = smov 0   ;;  %s1307_s16 = smov 0   ;;  %s1486_s0 = inlined_call_operand.vmem [shape: f32[2,8,2,96], index: 0, kind: input, shape index: {}]   ;;  %s1487_s1 = inlined_call_operand.vmem [shape: f32[2,32,96], index: 1, kind: input, shape index: {}]   ;;  %s1488_s2 = inlined_call_operand.vmem [shape: f32[2,1,96], index: 2, kind: input, shape index: {}]   ;;  %s1489_s3 = inlined_call_operand.vmem [shape: f32[2,2,32], index: 3, kind: input, shape index: {}]   ;;  %s1490_s4 = inlined_call_operand.vmem [shape: f32[2,8,2,32], index: 4, kind: output, shape index: {}]  }
   0x1   :  { %s1309_s17 = smov 0  }
   0x2 LB: > { %s26_s18 = sadd.s32 1, %s1271_s16  ;;  %p1122_p0 = scmp.ge.s32.totalorder %s1275_s17, 1  ;;  %s1275_s17 = sphi %s1309_s17, %s14_s17   ;;  %s1271_s16 = sphi %s1307_s16, %s1492_s16   ;;  %s1267_s15 = sphi %s1305_s15, %s1491_s15  }
   0x3   : > { %p28_p1 = scmp.ge.s32.totalorder %s26_s18, 2  ;;  %p234_p2 = scmp.lt.s32.totalorder %s1275_s17, 3 }
   0x5   : > { %s1494_s18 = smov (%p28_p1, %s26_s18), 0  ;;  %p235_p3 = pnand %p1122_p0, %p234_p2 }
   0x6   : > { %p293_p4 = scmp.lt.s32.totalorder (!%p235_p3), %s1267_s15, 1  ;;  %s1277_s7 = smov (!%p235_p3), 64  }
   0x7   : > { %238 = sbr.rel (%p235_p3) target bundleno = 4620 (0x120c), region = 36  ;;  %s1278_s14 = smov (!%p235_p3), 96  }
   0x8   : > { %s1130_s9 = smul.u32 (!%p235_p3), 14, %s1267_s15 }
   0x9   : > { %s1133_s25 = smul.u32 (!%p235_p3), 10, %s1267_s15 }
   0xa   : > { %s1160_s22 = smul.u32 (!%p235_p3), 4294967286, %s1267_s15 }
   0xc   : > { %s1327_s19 = scalar_select %p293_p4, %s1267_s15, 1  ;;  %vm341_vm0 = vcmask 254976   ;;  %vm356_vm1 = vcmask 261120  }
   0xe   : > { %s1175_s20 = sshll.u32 %s1327_s19, 5  ;;  %s1127_s21 = sshll.u32 %s1327_s19, 1 }
   0xf   : > { %s310_s24 = scalar_lea.vmem %s1487_s1, %s1175_s20  ;;  %s317_s27 = scalar_lea.vmem %s1489_s3, %s1127_s21 }
  0x10   : > { %v346_v0 = vld [vmem:[%s310_s24 + $0x18] sm:$0xff]  ;;  %v345_v1 = vld [vmem:[%s310_s24 + $0x10] sm:$0xff]  ;;  %s313_s30 = scalar_lea.vmem %s1488_s2, %s1327_s19  ;;  %v340_v2 = vld [vmem:[%s317_s27] sm:$0x3]  ;;  %s1174_s8 = sshll.u32 %s1327_s19, 4 }
  0x11   : > { %372 = vmatpush.msra.mxu0 %v346_v0  ;;  %448 = vmatpush.msra.mxu1 %v346_v0  ;;  %v344_v3 = vld [vmem:[%s310_s24 + $0x8] sm:$0xff]  ;;  %342 = vst.msk [vmem:[#allocation2] sm:$0x3] %vm341_vm0, %v340_v2  ;;  %v343_v4 = vld [vmem:[%s310_s24] sm:$0xff]  ;;  %s1359_s12 = scalar_lea.vmem %s1486_s0, %s1174_s8  ;;  %s1279_s20 = smov 32  }
  0x12   : > { %520 = vmatpush.msra.mxu2 %v346_v0  ;;  %591 = vmatpush.msra.mxu3 %v346_v0  ;;  %v1348_v6 = vld [vmem:[%s313_s30] ss:$0 sm:$0xff]  ;;  %s351_s13 = scalar_lea.vmem %s1359_s12, %s1130_s9  ;;  %s1372_s23 = scalar_lea.vmem %s1490_s4, %s1174_s8 }
  0x13   : > { %373 = vmatpush.msra.mxu0 %v345_v1  ;;  %449 = vmatpush.msra.mxu1 %v345_v1  ;;  %v352_v9 = vld [vmem:[%s351_s13] sm:$0x3]  ;;  %s426_s24 = scalar_lea.vmem %s1372_s23, %s1130_s9  ;;  %s1015_s19 = scalar_lea.vmem %s1359_s12, %s1133_s25 }
  0x14   : > { %521 = vmatpush.msra.mxu2 %v345_v1  ;;  %592 = vmatpush.msra.mxu3 %v345_v1  ;;  %v1134_v38 = vld [vmem:[%s1015_s19 + $0x2] sm:$0x3]  ;;  %s1019_s26 = scalar_lea.vmem %s1372_s23, %s1133_s25  ;;  %s1139_s27 = smul.u32 6, %s1267_s15 }
  0x15   : > { %374 = vmatpush.msra.mxu0 %v344_v3  ;;  %450 = vmatpush.msra.mxu1 %v344_v3  ;;  %s1145_s30 = sshll.u32 %s1267_s15, 1  ;;  %s644_s8 = ssub.s32 4, %s1267_s15 }
  0x16   : > { %522 = vmatpush.msra.mxu2 %v344_v3  ;;  %593 = vmatpush.msra.mxu3 %v344_v3  ;;  %s1023_s28 = scalar_lea.vmem %s1359_s12, %s1139_s27  ;;  %s1027_s29 = scalar_lea.vmem %s1372_s23, %s1139_s27 }
  0x17   : > { %375 = vmatpush.msra.mxu0 %v343_v4  ;;  %451 = vmatpush.msra.mxu1 %v343_v4  ;;  %v1140_v2 = vld [vmem:[%s1023_s28 + $0x4] sm:$0x3]  ;;  %s1030_s5 = scalar_lea.vmem %s1359_s12, %s1145_s30  ;;  %s1033_s6 = scalar_lea.vmem %s1372_s23, %s1145_s30 }
  0x18   : > { %523 = vmatpush.msra.mxu2 %v343_v4  ;;  %594 = vmatpush.msra.mxu3 %v343_v4  ;;  %v348_v5 = vld [vmem:[#allocation2] sm:$0x3]  ;;  %s1424_s9 = sshll.u32 %s644_s8, 1  ;;  %s1154_s13 = smul.u32 4294967290, %s1267_s15 }
  0x19   : > { %662 = vmatpush.msrb.mxu0 %v346_v0  ;;  %734 = vmatpush.msrb.mxu1 %v346_v0  ;;  %s646_s10 = scalar_lea.vmem %s1359_s12, %s1424_s9  ;;  %s713_s11 = scalar_lea.vmem %s1372_s23, %s1424_s9 }
  0x1a   : > { %1131 = vmatmul.msk.f32.vlgmr.msra.gmra.mxu0 %vm356_vm1, %v348_v5  ;;  %806 = vmatpush.msrb.mxu2 %v346_v0  ;;  %s1045_s21 = scalar_lea.vmem %s1372_s23, %s1154_s13  ;;  %s1053_s25 = scalar_lea.vmem %s1372_s23, %s1160_s22 }
  0x1b   : > { %663 = vmatpush.msrb.mxu0 %v345_v1  ;;  %735 = vmatpush.msrb.mxu1 %v345_v1  ;;  %s1166_s19 = smul.u32 4294967282, %s1267_s15 }
  0x1c   : > { %807 = vmatpush.msrb.mxu2 %v345_v1  ;;  %878 = vmatpush.msrb.mxu3 %v346_v0 }
  0x1d   : > { %664 = vmatpush.msrb.mxu0 %v344_v3  ;;  %736 = vmatpush.msrb.mxu1 %v344_v3 }
  0x1e   : > { %808 = vmatpush.msrb.mxu2 %v344_v3  ;;  %879 = vmatpush.msrb.mxu3 %v345_v1 }
  0x1f   : > { %665 = vmatpush.msrb.mxu0 %v343_v4  ;;  %737 = vmatpush.msrb.mxu1 %v343_v4 }
  0x20   : > { %809 = vmatpush.msrb.mxu2 %v343_v4  ;;  %880 = vmatpush.msrb.mxu3 %v344_v3 }
  0x22   : > { %881 = vmatpush.msrb.mxu3 %v343_v4 }
  0x97   : > { %v377_v7 = vpop.f32.mrf.mxu0 }
  0x98   : > { %v378_v8 = vadd.f32 %v1348_v6, %v377_v7 }
  0x9a   : > { %401 = vrot.lane.b32.xlu0 %v378_v8, %s1277_s7  ;;  %v380_v10 = vadd.f32 %v378_v8, %v352_v9 }
  0x9c   : > { %v1132_v11 = vmul.f32 -1.442695, %v380_v10 }
  0x9e   : > { %1205 = vpow2.f32 %v1132_v11 }
  0xa4   : > { %v1206_v12 = vpop.eup %1205 }
  0xa5   : > { %v384_v13 = vadd.f32 1.0, %v1206_v12 }
  0xa7   : > { %1207 = vrcp.f32 %v384_v13  ;;  %v396_v19 = vand.u32 2147483648, %v384_v13  ;;  %vm390_vm3 = vweird.f32 %v384_v13  ;;  %v394_v20 = vand.u32 2147483647, %v384_v13 }
  0xa9   : > { %v397_v22 = vor.u32 1.1754944e-38, %v396_v19  ;;  %vm395_vm5 = vcmp.eq.f32.partialorder %v394_v20, 8.507059e+37 }
  0xad   : > { %v1208_v14 = vpop.eup %1207 }
  0xae   : > { %v386_v15 = vmul.f32 %v1208_v14, %v384_v13  ;;  %vm391_vm2 = vweird.f32 %v1208_v14 }
  0xaf   : > { %vm392_vm4 = vmor %vm390_vm3, %vm391_vm2 }
  0xb0   : > { %v387_v16 = vsub.f32 1.0, %v386_v15 }
  0xb2   : > { %v388_v17 = vmul.f32 %v1208_v14, %v387_v16 }
  0xb4   : > { %v389_v18 = vadd.f32 %v1208_v14, %v388_v17 }
  0xb6   : > { %v393_v21 = vsel %vm392_vm4, %v1208_v14, %v389_v18 }
  0xb7   : > { %v398_v24 = vsel %vm395_vm5, %v397_v22, %v393_v21 }
  0xb8   : > { %v411_v30 = vsub.f32 1.0, %v398_v24 }
 0x10c   : > { %v402_v23 = vpop.permute.xlu0 %401 }
 0x10d   : > { %v404_v25 = vmul.f32 %v402_v23, %v398_v24 }
 0x10f   : > { %406 = vrot.lane.b32.xlu0 %v404_v25, %s1277_s7 }
 0x181   : > { %v407_v26 = vpop.permute.xlu0 %406 }
 0x182   : > { %v409_v27 = vadd.f32 %v407_v26, %v352_v9 }
 0x184   : > { %1209 = vtanh.f32 %v409_v27 }
 0x18a   : > { %v1210_v28 = vpop.eup %1209 }
 0x18b   : > { %413 = vrot.lane.b32.xlu1 %v1210_v28, %s1278_s14 }
 0x193   : > { %417 = vrot.lane.b32.xlu1 %v348_v5, %s1279_s20  ;;  %s1041_s20 = scalar_lea.vmem %s1359_s12, %s1154_s13 }
 0x1fd   : > { %v414_v29 = vpop.permute.xlu1 %413 }
 0x1fe   : > { %v416_v32 = vmul.f32 %v414_v29, %v411_v30 }
 0x205   : > { %v418_v31 = vpop.permute.xlu1 %417 }
 0x206   : > { %v420_v33 = vmul.f32 %v418_v31, %v398_v24  ;;  %v1146_v31 = vld [vmem:[%s1030_s5 + $0x6] sm:$0x3] }
 0x208   : > { %v421_v34 = vadd.f32 %v420_v33, %v416_v32 }
 0x20a   : > { %423 = vrot.lane.b32.xlu2 %v421_v34, %s1278_s14 }
 0x264   : > { %v424_v35 = vpop.permute.xlu2 %423 }
 0x265   : > { %428 = vst.msk [vmem:[%s426_s24] sm:$0x3] %vm341_vm0, %v424_v35  ;;  %1135 = vmatmul.msk.f32.vlgmr.msra.gmra.mxu1 %vm356_vm1, %v424_v35  ;;  %s1049_s24 = scalar_lea.vmem %s1359_s12, %s1160_s22 }
 0x2e2   : > { %v453_v36 = vpop.f32.mrf.mxu1 }
 0x2e3   : > { %v454_v37 = vadd.f32 %v1348_v6, %v453_v36 }
 0x2e5   : > { %477 = vrot.lane.b32.xlu2 %v454_v37, %s1277_s7  ;;  %v456_v39 = vadd.f32 %v1134_v38, %v454_v37 }
 0x2e7   : > { %v1136_v40 = vmul.f32 -1.442695, %v456_v39 }
 0x2e9   : > { %1211 = vpow2.f32 %v1136_v40 }
 0x2ef   : > { %v1212_v41 = vpop.eup %1211 }
 0x2f0   : > { %v460_v42 = vadd.f32 1.0, %v1212_v41 }
 0x2f2   : > { %1213 = vrcp.f32 %v460_v42  ;;  %v472_v48 = vand.u32 2147483648, %v460_v42  ;;  %vm466_vm7 = vweird.f32 %v460_v42  ;;  %v470_v49 = vand.u32 2147483647, %v460_v42 }
 0x2f4   : > { %v473_v51 = vor.u32 1.1754944e-38, %v472_v48  ;;  %vm471_vm9 = vcmp.eq.f32.partialorder %v470_v49, 8.507059e+37 }
 0x2f8   : > { %v1214_v43 = vpop.eup %1213 }
 0x2f9   : > { %v462_v44 = vmul.f32 %v1214_v43, %v460_v42  ;;  %vm467_vm6 = vweird.f32 %v1214_v43 }
 0x2fa   : > { %vm468_vm8 = vmor %vm466_vm7, %vm467_vm6 }
 0x2fb   : > { %v463_v45 = vsub.f32 1.0, %v462_v44 }
 0x2fd   : > { %v464_v46 = vmul.f32 %v1214_v43, %v463_v45 }
 0x2ff   : > { %v465_v47 = vadd.f32 %v1214_v43, %v464_v46 }
 0x301   : > { %v469_v50 = vsel %vm468_vm8, %v1214_v43, %v465_v47 }
 0x302   : > { %v474_v53 = vsel %vm471_vm9, %v473_v51, %v469_v50 }
 0x303   : > { %v487_v58 = vsub.f32 1.0, %v474_v53  ;;  %v493_v60 = vmul.f32 %v474_v53, %v421_v34 }
 0x33f   : > { %v478_v52 = vpop.permute.xlu2 %477 }
 0x340   : > { %v480_v54 = vmul.f32 %v478_v52, %v474_v53 }
 0x342   : > { %482 = vrot.lane.b32.xlu0 %v480_v54, %s1277_s7 }
 0x3b4   : > { %v483_v55 = vpop.permute.xlu0 %482 }
 0x3b5   : > { %v485_v56 = vadd.f32 %v1134_v38, %v483_v55 }
 0x3b7   : > { %1215 = vtanh.f32 %v485_v56 }
 0x3bd   : > { %v1216_v57 = vpop.eup %1215 }
 0x3be   : > { %489 = vrot.lane.b32.xlu1 %v1216_v57, %s1278_s14 }
 0x430   : > { %v490_v59 = vpop.permute.xlu1 %489 }
 0x431   : > { %v492_v61 = vmul.f32 %v490_v59, %v487_v58  ;;  %v647_v59 = vld [vmem:[%s646_s10] sm:$0x3] }
 0x433   : > { %v494_v62 = vadd.f32 %v493_v60, %v492_v61 }
 0x435   : > { %496 = vrot.lane.b32.xlu2 %v494_v62, %s1278_s14 }
 0x48f   : > { %v497_v63 = vpop.permute.xlu2 %496 }
 0x490   : > { %1138 = vst.msk [vmem:[%s1019_s26 + $0x2] sm:$0x3] %vm341_vm0, %v497_v63  ;;  %1141 = vmatmul.msk.f32.vlgmr.msra.gmra.mxu2 %vm356_vm1, %v497_v63  ;;  %s1057_s26 = scalar_lea.vmem %s1359_s12, %s1166_s19  ;;  %s1061_s12 = scalar_lea.vmem %s1372_s23, %s1166_s19 }
 0x513   : > { %v525_v0 = vpop.f32.mrf.mxu2 }
 0x514   : > { %v526_v1 = vadd.f32 %v1348_v6, %v525_v0 }
 0x516   : > { %549 = vrot.lane.b32.xlu0 %v526_v1, %s1277_s7  ;;  %v528_v3 = vadd.f32 %v1140_v2, %v526_v1 }
 0x518   : > { %v1142_v4 = vmul.f32 -1.442695, %v528_v3 }
 0x51a   : > { %1217 = vpow2.f32 %v1142_v4 }
 0x520   : > { %v1218_v5 = vpop.eup %1217 }
 0x521   : > { %v532_v7 = vadd.f32 1.0, %v1218_v5 }
 0x523   : > { %1219 = vrcp.f32 %v532_v7  ;;  %v544_v13 = vand.u32 2147483648, %v532_v7  ;;  %vm538_vm11 = vweird.f32 %v532_v7  ;;  %v542_v14 = vand.u32 2147483647, %v532_v7 }
 0x525   : > { %v545_v16 = vor.u32 1.1754944e-38, %v544_v13  ;;  %vm543_vm13 = vcmp.eq.f32.partialorder %v542_v14, 8.507059e+37 }
 0x529   : > { %v1220_v8 = vpop.eup %1219 }
 0x52a   : > { %v534_v9 = vmul.f32 %v1220_v8, %v532_v7  ;;  %vm539_vm10 = vweird.f32 %v1220_v8 }
 0x52b   : > { %vm540_vm12 = vmor %vm538_vm11, %vm539_vm10 }
 0x52c   : > { %v535_v10 = vsub.f32 1.0, %v534_v9 }
 0x52e   : > { %v536_v11 = vmul.f32 %v1220_v8, %v535_v10 }
 0x530   : > { %v537_v12 = vadd.f32 %v1220_v8, %v536_v11 }
 0x532   : > { %v541_v15 = vsel %vm540_vm12, %v1220_v8, %v537_v12 }
 0x533   : > { %v546_v18 = vsel %vm543_vm13, %v545_v16, %v541_v15 }
 0x534   : > { %v559_v23 = vsub.f32 1.0, %v546_v18  ;;  %v565_v25 = vmul.f32 %v546_v18, %v494_v62 }
 0x588   : > { %v550_v17 = vpop.permute.xlu0 %549 }
 0x589   : > { %v552_v19 = vmul.f32 %v550_v17, %v546_v18 }
 0x58b   : > { %554 = vrot.lane.b32.xlu1 %v552_v19, %s1277_s7 }
 0x5fd   : > { %v555_v20 = vpop.permute.xlu1 %554 }
 0x5fe   : > { %v557_v21 = vadd.f32 %v1140_v2, %v555_v20 }
 0x600   : > { %1221 = vtanh.f32 %v557_v21 }
 0x606   : > { %v1222_v22 = vpop.eup %1221 }
 0x607   : > { %561 = vrot.lane.b32.xlu2 %v1222_v22, %s1278_s14 }
 0x661   : > { %v562_v24 = vpop.permute.xlu2 %561 }
 0x662   : > { %v564_v26 = vmul.f32 %v562_v24, %v559_v23  ;;  %v1155_v24 = vld [vmem:[%s1041_s20 + $0xa] sm:$0x3] }
 0x664   : > { %v566_v27 = vadd.f32 %v565_v25, %v564_v26 }
 0x666   : > { %568 = vrot.lane.b32.xlu0 %v566_v27, %s1278_s14 }
 0x6d8   : > { %v569_v28 = vpop.permute.xlu0 %568 }
 0x6d9   : > { %1144 = vst.msk [vmem:[%s1027_s29 + $0x4] sm:$0x3] %vm341_vm0, %v569_v28  ;;  %1147 = vmatmul.msk.f32.vlgmr.msra.gmra.mxu3 %vm356_vm1, %v569_v28 }
 0x75c   : > { %v596_v29 = vpop.f32.mrf.mxu3 }
 0x75d   : > { %v597_v30 = vadd.f32 %v1348_v6, %v596_v29 }
 0x75f   : > { %620 = vrot.lane.b32.xlu1 %v597_v30, %s1277_s7  ;;  %v599_v32 = vadd.f32 %v1146_v31, %v597_v30 }
 0x761   : > { %v1148_v33 = vmul.f32 -1.442695, %v599_v32 }
 0x763   : > { %1223 = vpow2.f32 %v1148_v33 }
 0x769   : > { %v1224_v34 = vpop.eup %1223 }
 0x76a   : > { %v603_v35 = vadd.f32 1.0, %v1224_v34 }
 0x76c   : > { %1225 = vrcp.f32 %v603_v35  ;;  %v615_v41 = vand.u32 2147483648, %v603_v35  ;;  %vm609_vm15 = vweird.f32 %v603_v35  ;;  %v613_v42 = vand.u32 2147483647, %v603_v35 }
 0x76e   : > { %v616_v44 = vor.u32 1.1754944e-38, %v615_v41  ;;  %vm614_vm3 = vcmp.eq.f32.partialorder %v613_v42, 8.507059e+37 }
 0x772   : > { %v1226_v36 = vpop.eup %1225 }
 0x773   : > { %v605_v37 = vmul.f32 %v1226_v36, %v603_v35  ;;  %vm610_vm14 = vweird.f32 %v1226_v36 }
 0x774   : > { %vm611_vm2 = vmor %vm609_vm15, %vm610_vm14 }
 0x775   : > { %v606_v38 = vsub.f32 1.0, %v605_v37 }
 0x777   : > { %v607_v39 = vmul.f32 %v1226_v36, %v606_v38 }
 0x779   : > { %v608_v40 = vadd.f32 %v1226_v36, %v607_v39 }
 0x77b   : > { %v612_v43 = vsel %vm611_vm2, %v1226_v36, %v608_v40 }
 0x77c   : > { %v617_v46 = vsel %vm614_vm3, %v616_v44, %v612_v43 }
 0x77d   : > { %v630_v51 = vsub.f32 1.0, %v617_v46  ;;  %v636_v53 = vmul.f32 %v617_v46, %v566_v27 }
 0x7d1   : > { %v621_v45 = vpop.permute.xlu1 %620 }
 0x7d2   : > { %v623_v47 = vmul.f32 %v621_v45, %v617_v46 }
 0x7d4   : > { %625 = vrot.lane.b32.xlu2 %v623_v47, %s1277_s7 }
 0x82e   : > { %v626_v48 = vpop.permute.xlu2 %625 }
 0x82f   : > { %v628_v49 = vadd.f32 %v1146_v31, %v626_v48 }
 0x831   : > { %1227 = vtanh.f32 %v628_v49 }
 0x837   : > { %v1228_v50 = vpop.eup %1227 }
 0x838   : > { %632 = vrot.lane.b32.xlu0 %v1228_v50, %s1278_s14 }
 0x8aa   : > { %v633_v52 = vpop.permute.xlu0 %632 }
 0x8ab   : > { %v635_v54 = vmul.f32 %v633_v52, %v630_v51  ;;  %v1161_v52 = vld [vmem:[%s1049_s24 + $0xc] sm:$0x3] }
 0x8ad   : > { %v637_v55 = vadd.f32 %v636_v53, %v635_v54 }
 0x8af   : > { %639 = vrot.lane.b32.xlu1 %v637_v55, %s1278_s14 }
 0x921   : > { %v640_v56 = vpop.permute.xlu1 %639 }
 0x922   : > { %1150 = vst.msk [vmem:[%s1033_s6 + $0x6] sm:$0x3] %vm341_vm0, %v640_v56  ;;  %1152 = vmatmul.msk.f32.vlgmr.msrb.gmra.mxu0 %vm356_vm1, %v640_v56 }
 0x99f   : > { %v667_v57 = vpop.f32.mrf.mxu0 }
 0x9a0   : > { %v668_v58 = vadd.f32 %v1348_v6, %v667_v57 }
 0x9a2   : > { %691 = vrot.lane.b32.xlu2 %v668_v58, %s1277_s7  ;;  %v670_v60 = vadd.f32 %v668_v58, %v647_v59 }
 0x9a4   : > { %v1153_v61 = vmul.f32 -1.442695, %v670_v60 }
 0x9a6   : > { %1229 = vpow2.f32 %v1153_v61 }
 0x9ac   : > { %v1230_v62 = vpop.eup %1229 }
 0x9ad   : > { %v674_v63 = vadd.f32 1.0, %v1230_v62 }
 0x9af   : > { %1231 = vrcp.f32 %v674_v63  ;;  %v686_v5 = vand.u32 2147483648, %v674_v63  ;;  %vm680_vm5 = vweird.f32 %v674_v63  ;;  %v684_v7 = vand.u32 2147483647, %v674_v63 }
 0x9b1   : > { %v687_v9 = vor.u32 1.1754944e-38, %v686_v5  ;;  %vm685_vm7 = vcmp.eq.f32.partialorder %v684_v7, 8.507059e+37 }
 0x9b5   : > { %v1232_v0 = vpop.eup %1231 }
 0x9b6   : > { %v676_v1 = vmul.f32 %v1232_v0, %v674_v63  ;;  %vm681_vm4 = vweird.f32 %v1232_v0 }
 0x9b7   : > { %vm682_vm6 = vmor %vm680_vm5, %vm681_vm4 }
 0x9b8   : > { %v677_v2 = vsub.f32 1.0, %v676_v1 }
 0x9ba   : > { %v678_v3 = vmul.f32 %v1232_v0, %v677_v2 }
 0x9bc   : > { %v679_v4 = vadd.f32 %v1232_v0, %v678_v3 }
 0x9be   : > { %v683_v8 = vsel %vm682_vm6, %v1232_v0, %v679_v4 }
 0x9bf   : > { %v688_v11 = vsel %vm685_vm7, %v687_v9, %v683_v8 }
 0x9c0   : > { %v701_v16 = vsub.f32 1.0, %v688_v11  ;;  %v707_v18 = vmul.f32 %v688_v11, %v637_v55 }
 0x9fc   : > { %v692_v10 = vpop.permute.xlu2 %691 }
 0x9fd   : > { %v694_v12 = vmul.f32 %v692_v10, %v688_v11 }
 0x9ff   : > { %696 = vrot.lane.b32.xlu0 %v694_v12, %s1277_s7 }
 0xa71   : > { %v697_v13 = vpop.permute.xlu0 %696 }
 0xa72   : > { %v699_v14 = vadd.f32 %v697_v13, %v647_v59 }
 0xa74   : > { %1233 = vtanh.f32 %v699_v14 }
 0xa7a   : > { %v1234_v15 = vpop.eup %1233 }
 0xa7b   : > { %703 = vrot.lane.b32.xlu1 %v1234_v15, %s1278_s14 }
 0xaed   : > { %v704_v17 = vpop.permute.xlu1 %703 }
 0xaee   : > { %v706_v19 = vmul.f32 %v704_v17, %v701_v16  ;;  %v1167_v17 = vld [vmem:[%s1057_s26 + $0xe] sm:$0x3] }
 0xaf0   : > { %v708_v20 = vadd.f32 %v707_v18, %v706_v19 }
 0xaf2   : > { %710 = vrot.lane.b32.xlu2 %v708_v20, %s1278_s14 }
 0xb4c   : > { %v711_v21 = vpop.permute.xlu2 %710 }
 0xb4d   : > { %714 = vst.msk [vmem:[%s713_s11] sm:$0x3] %vm341_vm0, %v711_v21  ;;  %1156 = vmatmul.msk.f32.vlgmr.msrb.gmra.mxu1 %vm356_vm1, %v711_v21 }
 0xbca   : > { %v739_v22 = vpop.f32.mrf.mxu1 }
 0xbcb   : > { %v740_v23 = vadd.f32 %v1348_v6, %v739_v22 }
 0xbcd   : > { %763 = vrot.lane.b32.xlu0 %v740_v23, %s1277_s7  ;;  %v742_v25 = vadd.f32 %v1155_v24, %v740_v23 }
 0xbcf   : > { %v1157_v26 = vmul.f32 -1.442695, %v742_v25 }
 0xbd1   : > { %1235 = vpow2.f32 %v1157_v26 }
 0xbd7   : > { %v1236_v27 = vpop.eup %1235 }
 0xbd8   : > { %v746_v28 = vadd.f32 1.0, %v1236_v27 }
 0xbda   : > { %1237 = vrcp.f32 %v746_v28  ;;  %v758_v34 = vand.u32 2147483648, %v746_v28  ;;  %vm752_vm9 = vweird.f32 %v746_v28  ;;  %v756_v35 = vand.u32 2147483647, %v746_v28 }
 0xbdc   : > { %v759_v37 = vor.u32 1.1754944e-38, %v758_v34  ;;  %vm757_vm11 = vcmp.eq.f32.partialorder %v756_v35, 8.507059e+37 }
 0xbe0   : > { %v1238_v29 = vpop.eup %1237 }
 0xbe1   : > { %v748_v30 = vmul.f32 %v1238_v29, %v746_v28  ;;  %vm753_vm8 = vweird.f32 %v1238_v29 }
 0xbe2   : > { %vm754_vm10 = vmor %vm752_vm9, %vm753_vm8 }
 0xbe3   : > { %v749_v31 = vsub.f32 1.0, %v748_v30 }
 0xbe5   : > { %v750_v32 = vmul.f32 %v1238_v29, %v749_v31 }
 0xbe7   : > { %v751_v33 = vadd.f32 %v1238_v29, %v750_v32 }
 0xbe9   : > { %v755_v36 = vsel %vm754_vm10, %v1238_v29, %v751_v33 }
 0xbea   : > { %v760_v39 = vsel %vm757_vm11, %v759_v37, %v755_v36 }
 0xbeb   : > { %v773_v44 = vsub.f32 1.0, %v760_v39  ;;  %v779_v46 = vmul.f32 %v760_v39, %v708_v20 }
 0xc3f   : > { %v764_v38 = vpop.permute.xlu0 %763 }
 0xc40   : > { %v766_v40 = vmul.f32 %v764_v38, %v760_v39 }
 0xc42   : > { %768 = vrot.lane.b32.xlu1 %v766_v40, %s1277_s7 }
 0xcb4   : > { %v769_v41 = vpop.permute.xlu1 %768 }
 0xcb5   : > { %v771_v42 = vadd.f32 %v1155_v24, %v769_v41 }
 0xcb7   : > { %1239 = vtanh.f32 %v771_v42 }
 0xcbd   : > { %v1240_v43 = vpop.eup %1239 }
 0xcbe   : > { %775 = vrot.lane.b32.xlu2 %v1240_v43, %s1278_s14 }
 0xd18   : > { %v776_v45 = vpop.permute.xlu2 %775 }
 0xd19   : > { %v778_v47 = vmul.f32 %v776_v45, %v773_v44 }
 0xd1b   : > { %v780_v48 = vadd.f32 %v779_v46, %v778_v47 }
 0xd1d   : > { %782 = vrot.lane.b32.xlu0 %v780_v48, %s1278_s14 }
 0xd8f   : > { %v783_v49 = vpop.permute.xlu0 %782 }
 0xd90   : > { %1159 = vst.msk [vmem:[%s1045_s21 + $0xa] sm:$0x3] %vm341_vm0, %v783_v49  ;;  %1162 = vmatmul.msk.f32.vlgmr.msrb.gmra.mxu2 %vm356_vm1, %v783_v49 }
 0xe13   : > { %v811_v50 = vpop.f32.mrf.mxu2 }
 0xe14   : > { %v812_v51 = vadd.f32 %v1348_v6, %v811_v50 }
 0xe16   : > { %835 = vrot.lane.b32.xlu1 %v812_v51, %s1277_s7  ;;  %v814_v53 = vadd.f32 %v1161_v52, %v812_v51 }
 0xe18   : > { %v1163_v54 = vmul.f32 -1.442695, %v814_v53 }
 0xe1a   : > { %1241 = vpow2.f32 %v1163_v54 }
 0xe20   : > { %v1242_v55 = vpop.eup %1241 }
 0xe21   : > { %v818_v56 = vadd.f32 1.0, %v1242_v55 }
 0xe23   : > { %1243 = vrcp.f32 %v818_v56  ;;  %v830_v62 = vand.u32 2147483648, %v818_v56  ;;  %vm824_vm13 = vweird.f32 %v818_v56  ;;  %v828_v63 = vand.u32 2147483647, %v818_v56 }
 0xe25   : > { %v831_v1 = vor.u32 1.1754944e-38, %v830_v62  ;;  %vm829_vm15 = vcmp.eq.f32.partialorder %v828_v63, 8.507059e+37 }
 0xe29   : > { %v1244_v57 = vpop.eup %1243 }
 0xe2a   : > { %v820_v58 = vmul.f32 %v1244_v57, %v818_v56  ;;  %vm825_vm12 = vweird.f32 %v1244_v57 }
 0xe2b   : > { %vm826_vm14 = vmor %vm824_vm13, %vm825_vm12 }
 0xe2c   : > { %v821_v59 = vsub.f32 1.0, %v820_v58 }
 0xe2e   : > { %v822_v60 = vmul.f32 %v1244_v57, %v821_v59 }
 0xe30   : > { %v823_v61 = vadd.f32 %v1244_v57, %v822_v60 }
 0xe32   : > { %v827_v0 = vsel %vm826_vm14, %v1244_v57, %v823_v61 }
 0xe33   : > { %v832_v3 = vsel %vm829_vm15, %v831_v1, %v827_v0 }
 0xe34   : > { %v845_v9 = vsub.f32 1.0, %v832_v3  ;;  %v851_v11 = vmul.f32 %v832_v3, %v780_v48 }
 0xe88   : > { %v836_v2 = vpop.permute.xlu1 %835 }
 0xe89   : > { %v838_v4 = vmul.f32 %v836_v2, %v832_v3 }
 0xe8b   : > { %840 = vrot.lane.b32.xlu2 %v838_v4, %s1277_s7 }
 0xee5   : > { %v841_v5 = vpop.permute.xlu2 %840 }
 0xee6   : > { %v843_v7 = vadd.f32 %v1161_v52, %v841_v5 }
 0xee8   : > { %1245 = vtanh.f32 %v843_v7 }
 0xeee   : > { %v1246_v8 = vpop.eup %1245 }
 0xeef   : > { %847 = vrot.lane.b32.xlu0 %v1246_v8, %s1278_s14 }
 0xf61   : > { %v848_v10 = vpop.permute.xlu0 %847 }
 0xf62   : > { %v850_v12 = vmul.f32 %v848_v10, %v845_v9 }
 0xf64   : > { %v852_v13 = vadd.f32 %v851_v11, %v850_v12 }
 0xf66   : > { %854 = vrot.lane.b32.xlu1 %v852_v13, %s1278_s14 }
 0xfd8   : > { %v855_v14 = vpop.permute.xlu1 %854 }
 0xfd9   : > { %1165 = vst.msk [vmem:[%s1053_s25 + $0xc] sm:$0x3] %vm341_vm0, %v855_v14  ;;  %1168 = vmatmul.msk.f32.vlgmr.msrb.gmra.mxu3 %vm356_vm1, %v855_v14 }
0x105c   : > { %v883_v15 = vpop.f32.mrf.mxu3 }
0x105d   : > { %v884_v16 = vadd.f32 %v1348_v6, %v883_v15 }
0x105f   : > { %907 = vrot.lane.b32.xlu2 %v884_v16, %s1277_s7  ;;  %v886_v18 = vadd.f32 %v1167_v17, %v884_v16 }
0x1061   : > { %v1169_v19 = vmul.f32 -1.442695, %v886_v18 }
0x1063   : > { %1247 = vpow2.f32 %v1169_v19 }
0x1069   : > { %v1248_v20 = vpop.eup %1247 }
0x106a   : > { %v890_v21 = vadd.f32 1.0, %v1248_v20 }
0x106c   : > { %1249 = vrcp.f32 %v890_v21  ;;  %v902_v27 = vand.u32 2147483648, %v890_v21  ;;  %vm896_vm2 = vweird.f32 %v890_v21  ;;  %v900_v6 = vand.u32 2147483647, %v890_v21 }
0x106e   : > { %v903_v29 = vor.u32 1.1754944e-38, %v902_v27  ;;  %vm901_vm4 = vcmp.eq.f32.partialorder %v900_v6, 8.507059e+37 }
0x1072   : > { %v1250_v22 = vpop.eup %1249 }
0x1073   : > { %v892_v23 = vmul.f32 %v1250_v22, %v890_v21  ;;  %vm897_vm1 = vweird.f32 %v1250_v22 }
0x1074   : > { %vm898_vm3 = vmor %vm896_vm2, %vm897_vm1 }
0x1075   : > { %v893_v24 = vsub.f32 1.0, %v892_v23 }
0x1077   : > { %v894_v25 = vmul.f32 %v1250_v22, %v893_v24 }
0x1079   : > { %v895_v26 = vadd.f32 %v1250_v22, %v894_v25 }
0x107b   : > { %v899_v28 = vsel %vm898_vm3, %v1250_v22, %v895_v26 }
0x107c   : > { %v904_v31 = vsel %vm901_vm4, %v903_v29, %v899_v28 }
0x107d   : > { %v917_v36 = vsub.f32 1.0, %v904_v31  ;;  %v923_v38 = vmul.f32 %v904_v31, %v852_v13 }
0x10b9   : > { %v908_v30 = vpop.permute.xlu2 %907 }
0x10ba   : > { %v910_v32 = vmul.f32 %v908_v30, %v904_v31 }
0x10bc   : > { %912 = vrot.lane.b32.xlu0 %v910_v32, %s1277_s7 }
0x112e   : > { %v913_v33 = vpop.permute.xlu0 %912 }
0x112f   : > { %v915_v34 = vadd.f32 %v1167_v17, %v913_v33 }
0x1131   : > { %1251 = vtanh.f32 %v915_v34 }
0x1137   : > { %v1252_v35 = vpop.eup %1251 }
0x1138   : > { %919 = vrot.lane.b32.xlu1 %v1252_v35, %s1278_s14 }
0x11aa   : > { %v920_v37 = vpop.permute.xlu1 %919 }
0x11ab   : > { %v922_v39 = vmul.f32 %v920_v37, %v917_v36 }
0x11ad   : > { %v924_v40 = vadd.f32 %v923_v38, %v922_v39 }
0x11af   : > { %926 = vrot.lane.b32.xlu2 %v924_v40, %s1278_s14 }
0x1209   : > { %v927_v41 = vpop.permute.xlu2 %926 }
0x120a   : > { %1171 = vst.msk [vmem:[%s1061_s12 + $0xe] sm:$0x3] %vm341_vm0, %v927_v41 }
0x120b   : > { %931 = vst.msk [vmem:[#allocation2] sm:$0x3] %vm341_vm0, %v927_v41 }
0x120c PF: > { %s14_s17 = sadd.s32 1, %s1275_s17   ;;  %s1491_s15 = smov %s1271_s16 }
0x120d   : > { %p11_p5 = scmp.ge.s32.totalorder %s14_s17, 4   ;;  %s1492_s16 = smov %s1494_s18 }
0x120f   :  { %13 = sbr.rel (!%p11_p5) target bundleno = 2 (0x2), region = 95 }

</bundles_post_ra>
